<compile_context>
chip_gen: v7x
topology: tpu7x:2x2x1
jax: 0.10.0
libtpu: 0.0.40
codegen_flags: <defaults>
</compile_context>

<pallas_src>
import jax
import jax.numpy as jnp
from jax.experimental import pallas as pl
from jax.experimental.pallas import tpu as pltpu

IN_FEATURES = 1024
OUT_FEATURES = 1000
OUT_PADDED = 1024  # pad classifier width to a lane-dense multiple of 128


def _head_kernel(x_ref, w_ref, b_ref, o_ref):
    # x_ref: [TB, HW, C]        compute dtype (bf16) -- C on the lane axis
    # w_ref: [C, OUT_PADDED]    compute dtype, pre-scaled by 1/HW, VMEM-resident
    # b_ref: [1, OUT_PADDED]    f32, VMEM-resident
    # o_ref: [TB, OUT_PADDED]   f32
    x = x_ref[...].astype(jnp.float32)          # pool accumulation in f32
    pooled = jnp.sum(x, axis=1)                 # [TB, C]; 1/HW folded into weight
    logits = jnp.dot(
        pooled.astype(w_ref.dtype), w_ref[...],
        preferred_element_type=jnp.float32,     # MXU with f32 accumulation
    )
    o_ref[...] = logits + b_ref[...]            # bias broadcast over batch tile


def classification_head(x_nchw, weight, bias, *, block_b=64,
                        compute_dtype=jnp.bfloat16):
    """x_nchw: [B, 1024, H, W]; weight: [1000, 1024] (torch layout); bias: [1000]."""
    B, C, H, W = x_nchw.shape
    assert C == IN_FEATURES, "ClassificationHead expects 1024 channels"
    HW = H * W

    # Lane-dense activation layout: [B, HW, C] (C=1024 on the 128-wide lanes).
    x_bhwc = jnp.transpose(x_nchw, (0, 2, 3, 1)).reshape(B, HW, C)
    x_bhwc = x_bhwc.astype(compute_dtype)

    # Fold the 1/(H*W) mean scale into the transposed weight; pad N to 1024.
    w_t = weight.T.astype(jnp.float32) * (1.0 / HW)            # [C, 1000]
    w_pad = jnp.zeros((C, OUT_PADDED), jnp.float32).at[:, :OUT_FEATURES].set(w_t)
    w_pad = w_pad.astype(compute_dtype)
    bias_pad = jnp.zeros((1, OUT_PADDED), jnp.float32).at[0, :OUT_FEATURES].set(
        bias.astype(jnp.float32))

    # Batch tiling for the Pallas pipeline.
    if B <= block_b:
        tb = B                          # single full block (== full dim, always legal)
    else:
        assert block_b % 8 == 0, "batch tile must be a multiple of 8 when tiling"
        tb = block_b
    n_blocks = pl.cdiv(B, tb)
    b_rows = n_blocks * tb
    if b_rows != B:
        x_bhwc = jnp.pad(x_bhwc, ((0, b_rows - B), (0, 0), (0, 0)))

    # Scoped VMEM: double-buffered x/out tiles + resident weight/bias, headroom.
    x_item = jnp.dtype(compute_dtype).itemsize
    vmem_bytes = (2 * tb * HW * C * x_item         # activation tiles (double-buffered)
                  + 2 * C * OUT_PADDED * x_item    # weight (+ spare buffer)
                  + 2 * tb * OUT_PADDED * 4        # output tiles
                  + 2 * OUT_PADDED * 4)            # bias
    vmem_limit = min(max(int(vmem_bytes * 1.5) + (4 << 20), 32 << 20), 48 << 20)

    out = pl.pallas_call(
        _head_kernel,
        out_shape=jax.ShapeDtypeStruct((b_rows, OUT_PADDED), jnp.float32),
        grid_spec=pltpu.PrefetchScalarGridSpec(
            num_scalar_prefetch=0,
            grid=(n_blocks,),
            in_specs=[
                pl.BlockSpec((tb, HW, C), lambda i: (i, 0, 0)),        # batch tiles
                pl.BlockSpec((C, OUT_PADDED), lambda i: (0, 0)),       # resident weight
                pl.BlockSpec((1, OUT_PADDED), lambda i: (0, 0)),       # resident bias
            ],
            out_specs=pl.BlockSpec((tb, OUT_PADDED), lambda i: (i, 0)),
        ),
        compiler_params=pltpu.CompilerParams(
            dimension_semantics=("parallel",),   # shard batch across TCs on v7x
            vmem_limit_bytes=vmem_limit,
        ),
    )(x_bhwc, w_pad, bias_pad)

    # Slice off batch padding and the 24 zero-padded (garbage-free) classes.
    return out[:B, :OUT_FEATURES]


if __name__ == "__main__":
    key = jax.random.PRNGKey(0)
    kx, kw, kb = jax.random.split(key, 3)

    # Small spatial size, but channels must be 1024 (the module hard-codes it).
    B, C, H, W = 2, IN_FEATURES, 4, 4
    x = jax.random.normal(kx, (B, C, H, W), dtype=jnp.float32)

    # Deterministic synthetic parameters (PyTorch Linear weight layout: [out, in]).
    bound = 1.0 / (IN_FEATURES ** 0.5)
    weight = jax.random.uniform(
        kw, (OUT_FEATURES, IN_FEATURES), minval=-bound, maxval=bound,
        dtype=jnp.float32)
    bias = jax.random.uniform(
        kb, (OUT_FEATURES,), minval=-bound, maxval=bound, dtype=jnp.float32)

    out = classification_head(x, weight, bias)
    out = jax.block_until_ready(out)

    # Pure-JAX f32 reference (kernel runs the DMA/MXU path in bf16, so allow
    # bf16-level tolerance).
    ref = jnp.mean(x, axis=(2, 3)) @ weight.T + bias
    assert out.shape == (B, OUT_FEATURES)
    assert jnp.allclose(out, ref, atol=2e-2, rtol=2e-2), "mismatch vs reference"

    print("KERNEL_OK")
</pallas_src>

<mosaic_0001>
module attributes {stable_mosaic.version = 11 : i64} {
  func.func @_head_kernel(%arg0: i32, %arg1: memref<2x16x1024xbf16, #tpu.memory_space<vmem>>, %arg2: memref<1024x1024xbf16, #tpu.memory_space<vmem>>, %arg3: memref<1x1024xf32, #tpu.memory_space<vmem>>, %arg4: memref<2x1024xf32, #tpu.memory_space<vmem>>) attributes {dimension_semantics = [#tpu.dimension_semantics<parallel>], iteration_bounds = array<i64: 1>, scalar_prefetch = 0 : i64, scratch_operands = 0 : i64, tpu.core_type = #tpu.core_type<tc>, window_params = [{transform_indices = @transform_0, window_bounds = array<i64: 2, 16, 1024>}, {pipeline_mode = #tpu.pipeline_mode<synchronous>, transform_indices = @transform_1, window_bounds = array<i64: 1024, 1024>}, {pipeline_mode = #tpu.pipeline_mode<synchronous>, transform_indices = @transform_2, window_bounds = array<i64: 1, 1024>}, {transform_indices = @transform_3, window_bounds = array<i64: 2, 1024>}]} {
    %c0 = arith.constant 0 : index
    %c0_0 = arith.constant 0 : index
    %c0_1 = arith.constant 0 : index
    %0 = vector.load %arg1[%c0, %c0_0, %c0_1] : memref<2x16x1024xbf16, #tpu.memory_space<vmem>>, vector<2x16x1024xbf16>
    %1 = arith.extf %0 : vector<2x16x1024xbf16> to vector<2x16x1024xf32>
    %cst = arith.constant dense<0.000000e+00> : vector<2x1024xf32>
    %2 = vector.multi_reduction <add>, %1, %cst [1] : vector<2x16x1024xf32> to vector<2x1024xf32>
    %3 = arith.truncf %2 : vector<2x1024xf32> to vector<2x1024xbf16>
    %c0_2 = arith.constant 0 : index
    %c0_3 = arith.constant 0 : index
    %4 = vector.load %arg2[%c0_2, %c0_3] : memref<1024x1024xbf16, #tpu.memory_space<vmem>>, vector<1024x1024xbf16>
    %cst_4 = arith.constant dense<0.000000e+00> : vector<2x1024xf32>
    %5 = tpu.matmul %3, %4, %cst_4 {dimension_numbers = #tpu.dot_dimension_numbers<[1], [0], [0], [1], [0, 0, 1, 1], [], []>} : vector<2x1024xbf16>, vector<1024x1024xbf16>, vector<2x1024xf32> -> vector<2x1024xf32>
    %c0_5 = arith.constant 0 : index
    %c0_6 = arith.constant 0 : index
    %6 = vector.load %arg3[%c0_5, %c0_6] : memref<1x1024xf32, #tpu.memory_space<vmem>>, vector<1x1024xf32>
    %7 = vector.broadcast %6 : vector<1x1024xf32> to vector<2x1024xf32>
    %8 = arith.addf %5, %7 : vector<2x1024xf32>
    %c0_7 = arith.constant 0 : index
    %c0_8 = arith.constant 0 : index
    %9 = vector.load %arg4[%c0_7, %c0_8] : memref<2x1024xf32, #tpu.memory_space<vmem>>, vector<2x1024xf32>
    tpu.vector_store %arg4[%c0_7, %c0_8], %8 {strides = array<i32>} : memref<2x1024xf32, #tpu.memory_space<vmem>>, vector<2x1024xf32>,
    return
  }
  func.func @transform_0(%arg0: i32) -> (i32, i32, i32) {
    %c0_i32 = arith.constant 0 : i32
    %c0_i32_0 = arith.constant 0 : i32
    %c0_i32_1 = arith.constant 0 : i32
    return %arg0, %c0_i32, %c0_i32_0 : i32, i32, i32
  }
  func.func @transform_1(%arg0: i32) -> (i32, i32) {
    %c0_i32 = arith.constant 0 : i32
    %c0_i32_0 = arith.constant 0 : i32
    %c0_i32_1 = arith.constant 0 : i32
    return %c0_i32, %c0_i32_0 : i32, i32
  }
  func.func @transform_2(%arg0: i32) -> (i32, i32) {
    %c0_i32 = arith.constant 0 : i32
    %c0_i32_0 = arith.constant 0 : i32
    %c0_i32_1 = arith.constant 0 : i32
    return %c0_i32, %c0_i32_0 : i32, i32
  }
  func.func @transform_3(%arg0: i32) -> (i32, i32) {
    %c0_i32 = arith.constant 0 : i32
    %c0_i32_0 = arith.constant 0 : i32
    return %arg0, %c0_i32 : i32, i32
  }
}

</mosaic_0001>

<bundles_post_ra>
// kernel: tpu_custom_call.1
= control target key start
LH: loop header
LB: loop body
LE: loop exit
PB: predicated region body
PF: predicated region fallthrough
CT: control target
= control target key end

     0   :  { %8 = vsyncpa [#allocation3], 0  ;;  %s5001_s0 = inlined_call_operand.hbm [shape: bf16[2,16,1024], index: 0, kind: input, shape index: {}]   ;;  %s5002_s1 = inlined_call_operand.hbm [shape: bf16[1024,1024], index: 1, kind: input, shape index: {}]   ;;  %s5003_s2 = inlined_call_operand.hbm [shape: f32[1,1024], index: 2, kind: input, shape index: {}]   ;;  %s5004_s3 = inlined_call_operand.hbm [shape: f32[2,1024], index: 3, kind: output, shape index: {}]  }
   0x1   :  { %9 = vsyncpa [#allocation6], 0 }
   0x2   :  { %10 = vsyncpa [#allocation4], 0  ;;  %s4788_s12 = smov [#allocation5]   ;;  %s4789_s14 = smov [#allocation2]  }
   0x3   :  { %s28_s13 = sshll.u32 %s4788_s12, 4  ;;  %s16_s15 = sshll.u32 %s4789_s14, 4  ;;  %s29_s13 = int_to_ptr.vmem [resolvable:$true] %s28_s13  ;;  %s4815_s15 = int_to_ptr.vmem [resolvable:$true] %s16_s15 }
   0x4   :  { %s4694_s18 = scalar_lea.hbm %s5002_s1, 65536 }
   0x5   :  { %p4695_p0 = scmp.ne.s32.totalorder %s5002_s1, %s4694_s18  ;;  %p4698_p1 = scmp.lt.u32.totalorder %s4694_s18, %s5002_s1 }
   0x7   :  { %p4700_p2 = pnand %p4698_p1, %p4695_p0 }
   0x9   :  { %4703 = shalt.err (!%p4700_p2)
}
   0xa   :  { %s4704_s23 = scalar_lea.vmem %s29_s13, 65536  ;;  %p4709_p4 = scmp.lt.s32.totalorder %s29_s13, %s29_s13 }
   0xb   :  { %p4705_p3 = scmp.ne.s32.totalorder %s29_s13, %s4704_s23  ;;  %p4710_p5 = scmp.lt.s32.totalorder %s4704_s23, %s4704_s23 }
   0xd   :  { %p4711_p6 = por %p4710_p5, %p4709_p4 }
   0xf   :  { %p4712_p7 = pnand %p4711_p6, %p4705_p3 }
  0x11   :  { %4715 = shalt.err (!%p4712_p7)
}
  0x12   :  { %s4790_s24 = smov 512   ;;  %s4791_s25 = smov 32  }
  0x13   :  { %34 = dma.hbm_to_vmem [thread:$0]  %s5002_s1, 65536, %s29_s13, [#allocation6], %s4790_s24, %s4790_s24, %s4791_s25  }
  0x14   :  { %s4716_s30 = scalar_lea.hbm %s5001_s0, 2048 }
  0x15   :  { %p4717_p8 = scmp.ne.s32.totalorder %s5001_s0, %s4716_s30  ;;  %p4720_p9 = scmp.lt.u32.totalorder %s4716_s30, %s5001_s0 }
  0x17   :  { %p4722_p10 = pnand %p4720_p9, %p4717_p8 }
  0x19   :  { %4725 = shalt.err (!%p4722_p10)
}
  0x1a   :  { %s4726_s8 = scalar_lea.vmem %s4815_s15, 2048  ;;  %p4731_p12 = scmp.lt.s32.totalorder %s4815_s15, %s4815_s15 }
  0x1b   :  { %p4727_p11 = scmp.ne.s32.totalorder %s4815_s15, %s4726_s8  ;;  %p4732_p13 = scmp.lt.s32.totalorder %s4726_s8, %s4726_s8 }
  0x1d   :  { %p4733_p0 = por %p4732_p13, %p4731_p12 }
  0x1f   :  { %p4734_p1 = pnand %p4733_p0, %p4727_p11 }
  0x21   :  { %4737 = shalt.err (!%p4734_p1)
}
  0x22   :  { %22 = dma.hbm_to_vmem [thread:$0]  %s5001_s0, 2048, %s4815_s15, [#allocation3], %s4790_s24, %s4790_s24, %s4791_s25  }
  0x23   :  { %s4792_s10 = smov [#allocation7]   ;;  %s4738_s14 = scalar_lea.hbm %s5003_s2, 128 }
  0x24   :  { %s41_s11 = sshll.u32 %s4792_s10, 4  ;;  %p4739_p2 = scmp.ne.s32.totalorder %s5003_s2, %s4738_s14  ;;  %s42_s11 = int_to_ptr.vmem [resolvable:$true] %s41_s11 }
  0x25   :  { %p4742_p3 = scmp.lt.u32.totalorder %s4738_s14, %s5003_s2 }
  0x27   :  { %p4744_p4 = pnand %p4742_p3, %p4739_p2 }
  0x29   :  { %4747 = shalt.err (!%p4744_p4)
}
  0x2a   :  { %s4748_s20 = scalar_lea.vmem %s42_s11, 128  ;;  %p4753_p6 = scmp.lt.s32.totalorder %s42_s11, %s42_s11 }
  0x2b   :  { %p4749_p5 = scmp.ne.s32.totalorder %s42_s11, %s4748_s20  ;;  %p4754_p7 = scmp.lt.s32.totalorder %s4748_s20, %s4748_s20 }
  0x2d   :  { %p4755_p8 = por %p4754_p7, %p4753_p6 }
  0x2f   :  { %p4756_p9 = pnand %p4755_p8, %p4749_p5 }
  0x31   :  { %4759 = shalt.err (!%p4756_p9)
}
  0x32   :  { %44 = dma.hbm_to_vmem [thread:$0]  %s5003_s2, 128, %s42_s11, [#allocation6]  }
  0x33   :  { %4782 = dma.done.wait [#allocation3], 2048  }
  0x34   :  { %4783 = vsyncadd [#allocation3], 4294965248 }
  0x35   :  { %4784 = dma.done.wait [#allocation6], 65664  }
  0x36   :  { %4785 = vsyncadd [#allocation6], 4294901632  ;;  %v230_v0 = vld [vmem:[#allocation5] sm:$0xff]  ;;  %v231_v2 = vld [vmem:[#allocation5 + $0x8] sm:$0xff]  ;;  %vm816_vm0 = vcmask 1041409   ;;  %s4794_s2 = smov [#allocation8]  }
  0x37   :  { %v234_v1 = vld [vmem:[#allocation5 + $0x20] sm:$0xff]  ;;  %v235_v4 = vld [vmem:[#allocation5 + $0x28] sm:$0xff]  ;;  %s4109_s21 = sshll.u32 %s4794_s2, 4  ;;  %s4110_s21 = int_to_ptr.vmem [resolvable:$true] %s4109_s21 }
  0x38   :  { %v4120_v3 = vcombine.high %v230_v0, %v234_v1  ;;  %v4119_v5 = vcombine.low %v230_v0, %v234_v1  ;;  %v238_v6 = vld [vmem:[#allocation5 + $0x40] sm:$0xff]  ;;  %v4122_v8 = vcombine.high %v231_v2, %v235_v4  ;;  %v4121_v9 = vcombine.low %v231_v2, %v235_v4  ;;  %v239_v11 = vld [vmem:[#allocation5 + $0x48] sm:$0xff]  ;;  %s4760_s22 = scalar_lea.vmem %s4110_s21, 256  ;;  %p4765_p11 = scmp.lt.s32.totalorder %s4110_s21, %s4110_s21 }
  0x39   :  { %v242_v7 = vld [vmem:[#allocation5 + $0x60] sm:$0xff]  ;;  %v243_v12 = vld [vmem:[#allocation5 + $0x68] sm:$0xff]  ;;  %p4761_p10 = scmp.ne.s32.totalorder %s4110_s21, %s4760_s22  ;;  %p4766_p12 = scmp.lt.s32.totalorder %s4760_s22, %s4760_s22 }
  0x3a   :  { %v4128_v10 = vcombine.high %v238_v6, %v242_v7  ;;  %v246_v13 = vld [vmem:[#allocation5 + $0x80] sm:$0xff]  ;;  %3401 = vmatprep.subr.bf16.mxu0 %v4120_v3  ;;  %v4130_v14 = vcombine.high %v239_v11, %v243_v12  ;;  %v247_v16 = vld [vmem:[#allocation5 + $0x88] sm:$0xff]  ;;  %3565 = vmatprep.subr.bf16.mxu1 %v4122_v8  ;;  %v4127_v18 = vcombine.low %v238_v6, %v242_v7 }
  0x3b   :  { %v250_v15 = vld [vmem:[#allocation5 + $0xa0] sm:$0xff]  ;;  %v251_v17 = vld [vmem:[#allocation5 + $0xa8] sm:$0xff]  ;;  %3402 = vmatpush1.bf16.msra.mxu0 %v4119_v5  ;;  %3566 = vmatpush1.bf16.msra.mxu1 %v4121_v9  ;;  %v4129_v19 = vcombine.low %v239_v11, %v243_v12  ;;  %p4767_p13 = por %p4766_p12, %p4765_p11 }
  0x3c   :  { %3403 = vmatprep.subr.bf16.mxu0 %v4128_v10  ;;  %v4136_v20 = vcombine.high %v246_v13, %v250_v15  ;;  %3567 = vmatprep.subr.bf16.mxu1 %v4130_v14  ;;  %v4138_v21 = vcombine.high %v247_v16, %v251_v17  ;;  %v254_v22 = vld [vmem:[#allocation5 + $0xc0] sm:$0xff]  ;;  %v255_v24 = vld [vmem:[#allocation5 + $0xc8] sm:$0xff]  ;;  %v4135_v26 = vcombine.low %v246_v13, %v250_v15 }
  0x3d   :  { %v258_v23 = vld [vmem:[#allocation5 + $0xe0] sm:$0xff]  ;;  %v259_v25 = vld [vmem:[#allocation5 + $0xe8] sm:$0xff]  ;;  %v4137_v27 = vcombine.low %v247_v16, %v251_v17  ;;  %p4768_p0 = pnand %p4767_p13, %p4761_p10 }
  0x3e   :  { %v4144_v28 = vcombine.high %v254_v22, %v258_v23  ;;  %v4146_v29 = vcombine.high %v255_v24, %v259_v25  ;;  %v262_v30 = vld [vmem:[#allocation5 + $0x100] sm:$0xff]  ;;  %v263_v32 = vld [vmem:[#allocation5 + $0x108] sm:$0xff]  ;;  %v4143_v34 = vcombine.low %v254_v22, %v258_v23  ;;  %v4145_v35 = vcombine.low %v255_v24, %v259_v25 }
  0x3f   :  { %3404 = vmatpush1.bf16.msra.mxu0 %v4127_v18  ;;  %3568 = vmatpush1.bf16.msra.mxu1 %v4129_v19  ;;  %v266_v31 = vld [vmem:[#allocation5 + $0x120] sm:$0xff]  ;;  %v267_v33 = vld [vmem:[#allocation5 + $0x128] sm:$0xff] }
  0x40   :  { %3405 = vmatprep.subr.bf16.mxu0 %v4136_v20  ;;  %3569 = vmatprep.subr.bf16.mxu1 %v4138_v21  ;;  %v4152_v36 = vcombine.high %v262_v30, %v266_v31  ;;  %v4154_v37 = vcombine.high %v263_v32, %v267_v33  ;;  %v270_v38 = vld [vmem:[#allocation5 + $0x140] sm:$0xff]  ;;  %v271_v40 = vld [vmem:[#allocation5 + $0x148] sm:$0xff]  ;;  %v4151_v42 = vcombine.low %v262_v30, %v266_v31 }
  0x41   :  { %v274_v39 = vld [vmem:[#allocation5 + $0x160] sm:$0xff]  ;;  %v275_v41 = vld [vmem:[#allocation5 + $0x168] sm:$0xff]  ;;  %v4153_v43 = vcombine.low %v263_v32, %v267_v33 }
  0x42   :  { %v4160_v44 = vcombine.high %v270_v38, %v274_v39  ;;  %v4162_v45 = vcombine.high %v271_v40, %v275_v41  ;;  %v278_v46 = vld [vmem:[#allocation5 + $0x180] sm:$0xff]  ;;  %v279_v48 = vld [vmem:[#allocation5 + $0x188] sm:$0xff]  ;;  %v4159_v50 = vcombine.low %v270_v38, %v274_v39  ;;  %v4161_v51 = vcombine.low %v271_v40, %v275_v41 }
  0x43   :  { %3406 = vmatpush1.bf16.msra.mxu0 %v4135_v26  ;;  %3570 = vmatpush1.bf16.msra.mxu1 %v4137_v27  ;;  %v282_v47 = vld [vmem:[#allocation5 + $0x1a0] sm:$0xff]  ;;  %v283_v49 = vld [vmem:[#allocation5 + $0x1a8] sm:$0xff] }
  0x44   :  { %3407 = vmatprep.subr.bf16.mxu0 %v4144_v28  ;;  %3571 = vmatprep.subr.bf16.mxu1 %v4146_v29  ;;  %v4168_v52 = vcombine.high %v278_v46, %v282_v47  ;;  %v286_v53 = vld [vmem:[#allocation5 + $0x1c0] sm:$0xff]  ;;  %v4170_v56 = vcombine.high %v279_v48, %v283_v49  ;;  %v287_v62 = vld [vmem:[#allocation5 + $0x1c8] sm:$0xff]  ;;  %v4167_v4 = vcombine.low %v278_v46, %v282_v47 }
  0x45   :  { %v54_v54 = vld [vmem:[#allocation2] sm:$0xff]  ;;  %v291_v63 = vld [vmem:[#allocation5 + $0x1e8] sm:$0xff]  ;;  %v4169_v5 = vcombine.low %v279_v48, %v283_v49 }
  0x46   :  { %v58_v55 = vld [vmem:[#allocation2 + $0x20] sm:$0xff]  ;;  %v71_v60 = vunpack.c.h.bf16 %v54_v54  ;;  %v70_v2 = vunpack.c.l.bf16 %v54_v54  ;;  %v4178_v11 = vcombine.high %v287_v62, %v291_v63  ;;  %v295_v16 = vld [vmem:[#allocation5 + $0x208] sm:$0xff]  ;;  %v4177_v23 = vcombine.low %v287_v62, %v291_v63 }
  0x47   :  { %3408 = vmatpush1.bf16.msra.mxu0 %v4143_v34  ;;  %3572 = vmatpush1.bf16.msra.mxu1 %v4145_v35  ;;  %v290_v57 = vld [vmem:[#allocation5 + $0x1e0] sm:$0xff]  ;;  %v79_v61 = vunpack.c.h.bf16 %v58_v55  ;;  %v78_v3 = vunpack.c.l.bf16 %v58_v55  ;;  %v299_v17 = vld [vmem:[#allocation5 + $0x228] sm:$0xff] }
  0x48   :  { %3409 = vmatprep.subr.bf16.mxu0 %v4152_v36  ;;  %3573 = vmatprep.subr.bf16.mxu1 %v4154_v37  ;;  %v62_v58 = vld [vmem:[#allocation2 + $0x40] sm:$0xff]  ;;  %v4176_v7 = vcombine.high %v286_v53, %v290_v57  ;;  %v4175_v20 = vcombine.low %v286_v53, %v290_v57  ;;  %v4186_v27 = vcombine.high %v295_v16, %v299_v17  ;;  %v303_v31 = vld [vmem:[#allocation5 + $0x248] sm:$0xff] }
  0x49   :  { %v66_v59 = vld [vmem:[#allocation2 + $0x60] sm:$0xff]  ;;  %v87_v0 = vunpack.c.h.bf16 %v62_v58  ;;  %v109_v6 = vadd.f32 %v79_v61, %v71_v60  ;;  %v86_v9 = vunpack.c.l.bf16 %v62_v58  ;;  %v102_v15 = vadd.f32 %v78_v3, %v70_v2  ;;  %v307_v32 = vld [vmem:[#allocation5 + $0x268] sm:$0xff] }
  0x4a   :  { %v95_v1 = vunpack.c.h.bf16 %v66_v59  ;;  %v94_v10 = vunpack.c.l.bf16 %v66_v59  ;;  %v294_v12 = vld [vmem:[#allocation5 + $0x200] sm:$0xff]  ;;  %v4185_v38 = vcombine.low %v295_v16, %v299_v17  ;;  %v4194_v41 = vcombine.high %v303_v31, %v307_v32  ;;  %v315_v46 = vld [vmem:[#allocation5 + $0x2a8] sm:$0xff] }
  0x4b   :  { %3410 = vmatpush1.bf16.msra.mxu0 %v4151_v42  ;;  %3574 = vmatpush1.bf16.msra.mxu1 %v4153_v43  ;;  %v298_v13 = vld [vmem:[#allocation5 + $0x220] sm:$0xff]  ;;  %v110_v14 = vrot.slane %v109_v6, 4  ;;  %v103_v22 = vrot.slane %v102_v15, 4  ;;  %v319_v59 = vld [vmem:[#allocation5 + $0x2c8] sm:$0xff] }
  0x4c   :  { %3411 = vmatprep.subr.bf16.mxu0 %v4160_v44  ;;  %3575 = vmatprep.subr.bf16.mxu1 %v4162_v45  ;;  %v165_v8 = vadd.f32 %v95_v1, %v87_v0  ;;  %v158_v19 = vadd.f32 %v94_v10, %v86_v9  ;;  %v4184_v24 = vcombine.high %v294_v12, %v298_v13  ;;  %v302_v28 = vld [vmem:[#allocation5 + $0x240] sm:$0xff]  ;;  %v311_v45 = vld [vmem:[#allocation5 + $0x288] sm:$0xff] }
  0x4d   :  { %v111_v21 = vadd.f32 %v110_v14, %v109_v6  ;;  %v306_v29 = vld [vmem:[#allocation5 + $0x260] sm:$0xff]  ;;  %v4183_v34 = vcombine.low %v294_v12, %v298_v13  ;;  %v104_v36 = vadd.f32 %v103_v22, %v102_v15  ;;  %v4202_v55 = vcombine.high %v311_v45, %v315_v46  ;;  %v323_v60 = vld [vmem:[#allocation5 + $0x2e8] sm:$0xff] }
  0x4e   :  { %v166_v18 = vrot.slane %v165_v8, 4  ;;  %v159_v26 = vrot.slane %v158_v19, 4  ;;  %v4192_v39 = vcombine.high %v302_v28, %v306_v29  ;;  %v310_v42 = vld [vmem:[#allocation5 + $0x280] sm:$0xff]  ;;  %v4191_v48 = vcombine.low %v302_v28, %v306_v29  ;;  %v331_v9 = vld [vmem:[#allocation5 + $0x328] sm:$0xff] }
  0x4f   :  { %3412 = vmatpush1.bf16.msra.mxu0 %v4159_v50  ;;  %3576 = vmatpush1.bf16.msra.mxu1 %v4161_v51  ;;  %v112_v30 = vrot.slane %v111_v21, 2  ;;  %v314_v43 = vld [vmem:[#allocation5 + $0x2a0] sm:$0xff]  ;;  %v105_v50 = vrot.slane %v104_v36, 2  ;;  %v4201_v2 = vcombine.low %v311_v45, %v315_v46  ;;  %v4861_v15 = vld [vmem:[#allocation2 + $0x8] sm:$0xff]  ;;  %v4209_v17 = vcombine.low %v319_v59, %v323_v60 }
  0x50   :  { %3413 = vmatprep.subr.bf16.mxu0 %v4168_v52  ;;  %3577 = vmatprep.subr.bf16.mxu1 %v4170_v56  ;;  %v167_v25 = vadd.f32 %v166_v18, %v165_v8  ;;  %v160_v37 = vadd.f32 %v159_v26, %v158_v19  ;;  %v4193_v52 = vcombine.low %v303_v31, %v307_v32  ;;  %v318_v56 = vld [vmem:[#allocation5 + $0x2c0] sm:$0xff]  ;;  %v327_v8 = vld [vmem:[#allocation5 + $0x308] sm:$0xff] }
  0x51   :  { %v113_v35 = vadd.f32 %v112_v30, %v111_v21  ;;  %v4200_v53 = vcombine.high %v310_v42, %v314_v43  ;;  %v322_v57 = vld [vmem:[#allocation5 + $0x2e0] sm:$0xff]  ;;  %v4199_v62 = vcombine.low %v310_v42, %v314_v43  ;;  %v106_v0 = vadd.f32 %v105_v50, %v104_v36  ;;  %v4863_v16 = vld [vmem:[#allocation2 + $0x28] sm:$0xff] }
  0x52   :  { %v168_v33 = vrot.slane %v167_v25, 2  ;;  %v161_v51 = vrot.slane %v160_v37, 2  ;;  %v4208_v3 = vcombine.high %v318_v56, %v322_v57  ;;  %v326_v6 = vld [vmem:[#allocation5 + $0x300] sm:$0xff]  ;;  %v4218_v19 = vcombine.high %v327_v8, %v331_v9  ;;  %v4866_v22 = vld [vmem:[#allocation2 + $0x48] sm:$0xff] }
  0x53   :  { %3414 = vmatpush1.bf16.msra.mxu0 %v4167_v4  ;;  %3578 = vmatpush1.bf16.msra.mxu1 %v4169_v5  ;;  %v114_v44 = vrot.slane %v113_v35, 1  ;;  %v4210_v5 = vcombine.high %v319_v59, %v323_v60  ;;  %v107_v13 = vrot.slane %v106_v0, 1  ;;  %v338_v21 = vld [vmem:[#allocation5 + $0x360] sm:$0xff]  ;;  %v81_v26 = vunpack.c.h.bf16 %v4863_v16  ;;  %v4871_v30 = vld [vmem:[#allocation2 + $0x68] sm:$0xff] }
  0x54   :  { %3415 = vmatprep.subr.bf16.mxu0 %v4176_v7  ;;  %3579 = vmatprep.subr.bf16.mxu1 %v4178_v11  ;;  %v169_v40 = vadd.f32 %v168_v33, %v167_v25  ;;  %v162_v1 = vadd.f32 %v161_v51, %v160_v37  ;;  %v330_v7 = vld [vmem:[#allocation5 + $0x320] sm:$0xff]  ;;  %v4207_v11 = vcombine.low %v318_v56, %v322_v57  ;;  %v73_v25 = vunpack.c.h.bf16 %v4861_v15  ;;  %v343_v37 = vld [vmem:[#allocation5 + $0x388] sm:$0xff] }
  0x55   :  { %v115_v49 = vadd.f32 %v114_v44, %v113_v35  ;;  %v4216_v18 = vcombine.high %v326_v6, %v330_v7  ;;  %v108_v28 = vadd.f32 %v107_v13, %v106_v0  ;;  %v4217_v31 = vcombine.low %v327_v8, %v331_v9  ;;  %v342_v35 = vld [vmem:[#allocation5 + $0x380] sm:$0xff]  ;;  %v351_v51 = vld [vmem:[#allocation5 + $0x3c8] sm:$0xff] }
  0x56   :  { %v170_v47 = vrot.slane %v169_v40, 1  ;;  %v163_v14 = vrot.slane %v162_v1, 1  ;;  %v89_v33 = vunpack.c.h.bf16 %v4866_v22  ;;  %v346_v36 = vld [vmem:[#allocation5 + $0x3a0] sm:$0xff] }
  0x57   :  { %3416 = vmatpush1.bf16.msra.mxu0 %v4175_v20  ;;  %3580 = vmatpush1.bf16.msra.mxu1 %v4177_v23  ;;  %v215_v58 = vpack.c.bf16 %v115_v49, %v115_v49  ;;  %v334_v20 = vld [vmem:[#allocation5 + $0x340] sm:$0xff]  ;;  %v335_v23 = vld [vmem:[#allocation5 + $0x348] sm:$0xff]  ;;  %v214_v42 = vpack.c.bf16 %v108_v28, %v108_v28  ;;  %v4232_v45 = vcombine.high %v342_v35, %v346_v36 }
  0x58   :  { %3417 = vmatprep.subr.bf16.mxu0 %v4184_v24  ;;  %3581 = vmatprep.subr.bf16.mxu1 %v4186_v27  ;;  %v171_v54 = vadd.f32 %v170_v47, %v169_v40  ;;  %v339_v24 = vld [vmem:[#allocation5 + $0x368] sm:$0xff]  ;;  %v4215_v27 = vcombine.low %v326_v6, %v330_v7  ;;  %v164_v29 = vadd.f32 %v163_v14, %v162_v1  ;;  %v350_v49 = vld [vmem:[#allocation5 + $0x3c0] sm:$0xff] }
  0x59   :  { %v801_v63 = vunpack.c.l.b16 %v215_v58  ;;  %v4224_v32 = vcombine.high %v334_v20, %v338_v21  ;;  %v123_v40 = vadd.f32 %v81_v26, %v73_v25  ;;  %v4225_v44 = vcombine.low %v335_v23, %v339_v24  ;;  %v354_v50 = vld [vmem:[#allocation5 + $0x3e0] sm:$0xff]  ;;  %v359_v1 = vld [vmem:[#allocation5 + $0x408] sm:$0xff] }
  0x5a   :  { %v223_v61 = vpack.c.bf16 %v171_v54, %v171_v54  ;;  %v222_v43 = vpack.c.bf16 %v164_v29, %v164_v29  ;;  %v800_v56 = vunpack.c.l.b16 %v214_v42  ;;  %v4240_v59 = vcombine.high %v350_v49, %v354_v50  ;;  %v362_v0 = vld [vmem:[#allocation5 + $0x420] sm:$0xff] }
  0x5b   :  { %3418 = vmatpush1.bf16.msra.mxu0 %v4183_v34  ;;  %3582 = vmatpush1.bf16.msra.mxu1 %v4185_v38  ;;  %v4226_v34 = vcombine.high %v335_v23, %v339_v24  ;;  %v347_v38 = vld [vmem:[#allocation5 + $0x3a8] sm:$0xff]  ;;  %v124_v46 = vrot.slane %v123_v40, 4  ;;  %v366_v13 = vld [vmem:[#allocation5 + $0x440] sm:$0xff] }
  0x5c   :  { %3419 = vmatprep.subr.bf16.mxu0 %v4192_v39  ;;  %3583 = vmatprep.subr.bf16.mxu1 %v4194_v41  ;;  %v809_v4 = vunpack.c.l.b16 %v223_v61  ;;  %v97_v39 = vunpack.c.h.bf16 %v4871_v30  ;;  %v4223_v41 = vcombine.low %v334_v20, %v338_v21  ;;  %v808_v57 = vunpack.c.l.b16 %v222_v43  ;;  %v370_v14 = vld [vmem:[#allocation5 + $0x460] sm:$0xff]  ;;  %v383_v43 = vld [vmem:[#allocation5 + $0x4c8] sm:$0xff] }
  0x5d   :  { %v4233_v58 = vcombine.low %v343_v37, %v347_v38  ;;  %v4256_v25 = vcombine.high %v366_v13, %v370_v14  ;;  %v374_v29 = vld [vmem:[#allocation5 + $0x480] sm:$0xff] }
  0x5e   :  { %v818_v10 = vsel %vm816_vm0, %v809_v4, %v801_v63  ;;  %v179_v47 = vadd.f32 %v97_v39, %v89_v33  ;;  %v358_v63 = vld [vmem:[#allocation5 + $0x400] sm:$0xff]  ;;  %v817_v6 = vsel %vm816_vm0, %v808_v57, %v800_v56  ;;  %v379_v33 = vld [vmem:[#allocation5 + $0x4a8] sm:$0xff] }
  0x5f   :  { %3420 = vmatpush1.bf16.msra.mxu0 %v4191_v48  ;;  %3584 = vmatpush1.bf16.msra.mxu1 %v4193_v52  ;;  %v4859_v12 = vpack.c.b16 %v818_v10, %v818_v10  ;;  %v4234_v48 = vcombine.high %v343_v37, %v347_v38  ;;  %v355_v52 = vld [vmem:[#allocation5 + $0x3e8] sm:$0xff]  ;;  %v4248_v8 = vcombine.high %v358_v63, %v362_v0  ;;  %v386_v42 = vld [vmem:[#allocation5 + $0x4e0] sm:$0xff] }
  0x60   :  { %3421 = vmatprep.subr.bf16.mxu0 %v4200_v53  ;;  %3585 = vmatprep.subr.bf16.mxu1 %v4202_v55  ;;  %v125_v53 = vadd.f32 %v124_v46, %v123_v40  ;;  %v180_v54 = vrot.slane %v179_v47, 4  ;;  %v4231_v55 = vcombine.low %v342_v35, %v346_v36  ;;  %v4241_v7 = vcombine.low %v351_v51, %v355_v52 }
  0x61   :  { %3433 = vmatprep.mubr.bf16.mxu0 %v4859_v12  ;;  %3597 = vmatprep.mubr.bf16.mxu1 %v4859_v12  ;;  %v4247_v23 = vcombine.low %v358_v63, %v362_v0  ;;  %v4255_v36 = vcombine.low %v366_v13, %v370_v14  ;;  %v96_v13 = vunpack.c.l.bf16 %v4871_v30  ;;  %v4891_v14 = vld [vmem:[#allocation2 + $0x30] sm:$0xff] }
  0x62   :  { %v126_v60 = vrot.slane %v125_v53, 2  ;;  %v181_v61 = vadd.f32 %v180_v54, %v179_v47  ;;  %v395_v54 = vld [vmem:[#allocation5 + $0x528] sm:$0xff]  ;;  %v83_v30 = vunpack.c.h.bf16 %v4891_v14 }
  0x63   :  { %3422 = vmatpush1.bf16.msra.mxu0 %v4199_v62  ;;  %3586 = vmatpush1.bf16.msra.mxu1 %v4201_v2  ;;  %v4242_v62 = vcombine.high %v351_v51, %v355_v52  ;;  %v363_v2 = vld [vmem:[#allocation5 + $0x428] sm:$0xff]  ;;  %v390_v51 = vld [vmem:[#allocation5 + $0x500] sm:$0xff] }
  0x64   :  { %3423 = vmatprep.subr.bf16.mxu0 %v4208_v3  ;;  %3587 = vmatprep.subr.bf16.mxu1 %v4210_v5  ;;  %v127_v3 = vadd.f32 %v126_v60, %v125_v53  ;;  %v182_v4 = vrot.slane %v181_v61, 2  ;;  %v4239_v5 = vcombine.low %v350_v49, %v354_v50  ;;  %v4249_v24 = vcombine.low %v359_v1, %v363_v2  ;;  %v394_v52 = vld [vmem:[#allocation5 + $0x520] sm:$0xff]  ;;  %v391_v53 = vld [vmem:[#allocation5 + $0x508] sm:$0xff] }
  0x65   :  { %v4280_v57 = vcombine.high %v390_v51, %v394_v52  ;;  %v402_v60 = vld [vmem:[#allocation5 + $0x560] sm:$0xff]  ;;  %v4279_v63 = vcombine.low %v390_v51, %v394_v52  ;;  %v4281_v0 = vcombine.low %v391_v53, %v395_v54  ;;  %v435_v51 = vld [vmem:[#allocation5 + $0x668] sm:$0xff] }
  0x66   :  { %v128_v9 = vrot.slane %v127_v3, 1  ;;  %v183_v10 = vadd.f32 %v182_v4, %v181_v61  ;;  %v399_v61 = vld [vmem:[#allocation5 + $0x548] sm:$0xff]  ;;  %v410_v4 = vld [vmem:[#allocation5 + $0x5a0] sm:$0xff] }
  0x67   :  { %3424 = vmatpush1.bf16.msra.mxu0 %v4207_v11  ;;  %3588 = vmatpush1.bf16.msra.mxu1 %v4209_v17  ;;  %v4250_v11 = vcombine.high %v359_v1, %v363_v2  ;;  %v4876_v17 = vpack.c.b16 %v817_v6, %v817_v6  ;;  %v407_v6 = vld [vmem:[#allocation5 + $0x588] sm:$0xff] }
  0x68   :  { %3425 = vmatprep.subr.bf16.mxu0 %v4216_v18  ;;  %3589 = vmatprep.subr.bf16.mxu1 %v4218_v19  ;;  %v367_v18 = vld [vmem:[#allocation5 + $0x448] sm:$0xff]  ;;  %v129_v20 = vadd.f32 %v128_v9, %v127_v3  ;;  %v184_v21 = vrot.slane %v183_v10, 1  ;;  %v406_v3 = vld [vmem:[#allocation5 + $0x580] sm:$0xff]  ;;  %v72_v9 = vunpack.c.l.bf16 %v4861_v15 }
  0x69   :  { %v371_v19 = vld [vmem:[#allocation5 + $0x468] sm:$0xff]  ;;  %v418_v15 = vld [vmem:[#allocation5 + $0x5e0] sm:$0xff] }
  0x6a   :  { %v185_v26 = vadd.f32 %v184_v21, %v183_v10  ;;  %v4258_v28 = vcombine.high %v367_v18, %v371_v19  ;;  %v4257_v37 = vcombine.low %v367_v18, %v371_v19  ;;  %v80_v10 = vunpack.c.l.bf16 %v4863_v16  ;;  %v4893_v18 = vld [vmem:[#allocation2 + $0x50] sm:$0xff]  ;;  %v419_v16 = vld [vmem:[#allocation5 + $0x5e8] sm:$0xff] }
  0x6b   :  { %3426 = vmatpush1.bf16.msra.mxu0 %v4215_v27  ;;  %3590 = vmatpush1.bf16.msra.mxu1 %v4217_v31  ;;  %v217_v27 = vpack.c.bf16 %v129_v20, %v129_v20  ;;  %v378_v31 = vld [vmem:[#allocation5 + $0x4a0] sm:$0xff]  ;;  %v4895_v19 = vld [vmem:[#allocation2 + $0x70] sm:$0xff]  ;;  %v4296_v21 = vcombine.high %v406_v3, %v410_v4 }
  0x6c   :  { %3427 = vmatprep.subr.bf16.mxu0 %v4224_v32  ;;  %3591 = vmatprep.subr.bf16.mxu1 %v4226_v34  ;;  %v375_v32 = vld [vmem:[#allocation5 + $0x488] sm:$0xff]  ;;  %v225_v34 = vpack.c.bf16 %v185_v26, %v185_v26  ;;  %v4264_v38 = vcombine.high %v374_v29, %v378_v31  ;;  %v4263_v46 = vcombine.low %v374_v29, %v378_v31  ;;  %v91_v26 = vunpack.c.h.bf16 %v4893_v18 }
  0x6d   :  { %v803_v35 = vunpack.c.l.b16 %v217_v27  ;;  %v4266_v40 = vcombine.high %v375_v32, %v379_v33  ;;  %v99_v27 = vunpack.c.h.bf16 %v4895_v19  ;;  %v116_v29 = vadd.f32 %v80_v10, %v72_v9  ;;  %v446_v9 = vld [vmem:[#allocation5 + $0x6c0] sm:$0xff] }
  0x6e   :  { %v811_v39 = vunpack.c.l.b16 %v225_v34  ;;  %v450_v10 = vld [vmem:[#allocation5 + $0x6e0] sm:$0xff] }
  0x6f   :  { %3428 = vmatpush1.bf16.msra.mxu0 %v4223_v41  ;;  %3592 = vmatpush1.bf16.msra.mxu1 %v4225_v44  ;;  %v382_v41 = vld [vmem:[#allocation5 + $0x4c0] sm:$0xff]  ;;  %v387_v44 = vld [vmem:[#allocation5 + $0x4e8] sm:$0xff] }
  0x70   :  { %3429 = vmatprep.subr.bf16.mxu0 %v4232_v45  ;;  %3593 = vmatprep.subr.bf16.mxu1 %v4234_v48  ;;  %v820_v45 = vsel %vm816_vm0, %v811_v39, %v803_v35  ;;  %v4265_v48 = vcombine.low %v375_v32, %v379_v33  ;;  %v4272_v49 = vcombine.high %v382_v41, %v386_v42  ;;  %v422_v35 = vld [vmem:[#allocation5 + $0x600] sm:$0xff] }
  0x71   :  { %v4881_v47 = vpack.c.b16 %v820_v45, %v820_v45  ;;  %v4274_v50 = vcombine.high %v383_v43, %v387_v44  ;;  %v4273_v56 = vcombine.low %v383_v43, %v387_v44 }
  0x73   :  { %3430 = vmatpush1.bf16.msra.mxu0 %v4231_v55  ;;  %3594 = vmatpush1.bf16.msra.mxu1 %v4233_v58  ;;  %v4271_v55 = vcombine.low %v382_v41, %v386_v42  ;;  %v4282_v58 = vcombine.high %v391_v53, %v395_v54  ;;  %v117_v42 = vrot.slane %v116_v29, 4 }
  0x74   :  { %3431 = vmatprep.subr.bf16.mxu0 %v4240_v59  ;;  %3595 = vmatprep.subr.bf16.mxu1 %v4242_v62  ;;  %v398_v59 = vld [vmem:[#allocation5 + $0x540] sm:$0xff]  ;;  %v403_v62 = vld [vmem:[#allocation5 + $0x568] sm:$0xff] }
  0x75   :  { %v4288_v1 = vcombine.high %v398_v59, %v402_v60  ;;  %v4290_v2 = vcombine.high %v399_v61, %v403_v62  ;;  %v4289_v20 = vcombine.low %v399_v61, %v403_v62  ;;  %v442_v61 = vld [vmem:[#allocation5 + $0x6a0] sm:$0xff]  ;;  %v439_v62 = vld [vmem:[#allocation5 + $0x688] sm:$0xff] }
  0x77   :  { %3432 = vmatpush1.bf16.msra.mxu0 %v4239_v5  ;;  %3596 = vmatpush1.bf16.msra.mxu1 %v4241_v7  ;;  %v4287_v5 = vcombine.low %v398_v59, %v402_v60  ;;  %v411_v7 = vld [vmem:[#allocation5 + $0x5a8] sm:$0xff]  ;;  %v438_v60 = vld [vmem:[#allocation5 + $0x680] sm:$0xff] }
  0x78   :  { %3442 = vmatprep.subr.bf16.mxu0 %v4248_v8  ;;  %3606 = vmatprep.subr.bf16.mxu1 %v4250_v11  ;;  %v4885_v8 = vld [vmem:[#allocation2 + $0x10] sm:$0xff]  ;;  %v88_v11 = vunpack.c.l.bf16 %v4866_v22  ;;  %v4297_v32 = vcombine.low %v407_v6, %v411_v7 }
  0x79   :  { %v75_v22 = vunpack.c.h.bf16 %v4885_v8 }
  0x7a   :  { %3434 = vmatmul.mubr.bf16.vlgmr.msra.gmra.mrb[0].mxu0 %v4876_v17  ;;  %3598 = vmatmul.mubr.bf16.vlgmr.msra.gmra.mrb[0].mxu1 %v4876_v17  ;;  %v172_v31 = vadd.f32 %v96_v13, %v88_v11  ;;  %v447_v11 = vld [vmem:[#allocation5 + $0x6c8] sm:$0xff] }
  0x7b   :  { %3443 = vmatpush1.bf16.msra.mxu0 %v4247_v23  ;;  %3607 = vmatpush1.bf16.msra.mxu1 %v4249_v24  ;;  %v4298_v23 = vcombine.high %v407_v6, %v411_v7  ;;  %v414_v24 = vld [vmem:[#allocation5 + $0x5c0] sm:$0xff]  ;;  %v137_v39 = vadd.f32 %v83_v30, %v75_v22  ;;  %v4328_v6 = vcombine.high %v438_v60, %v442_v61  ;;  %v451_v13 = vld [vmem:[#allocation5 + $0x6e8] sm:$0xff] }
  0x7c   :  { %3444 = vmatprep.subr.bf16.mxu0 %v4256_v25  ;;  %3608 = vmatprep.subr.bf16.mxu1 %v4258_v28  ;;  %v415_v25 = vld [vmem:[#allocation5 + $0x5c8] sm:$0xff]  ;;  %v4295_v28 = vcombine.low %v406_v3, %v410_v4  ;;  %v4304_v33 = vcombine.high %v414_v24, %v418_v15  ;;  %v4303_v41 = vcombine.low %v414_v24, %v418_v15  ;;  %v173_v43 = vrot.slane %v172_v31, 4  ;;  %v454_v30 = vld [vmem:[#allocation5 + $0x700] sm:$0xff] }
  0x7d   :  { %3474 = vmatprep.mubr.bf16.mxu0 %v4881_v47  ;;  %3638 = vmatprep.mubr.bf16.mxu1 %v4881_v47  ;;  %v4306_v34 = vcombine.high %v415_v25, %v419_v16  ;;  %v4305_v44 = vcombine.low %v415_v25, %v419_v16  ;;  %v138_v52 = vrot.slane %v137_v39, 4  ;;  %v4336_v16 = vcombine.high %v446_v9, %v450_v10 }
  0x7e   :  { %v4338_v22 = vcombine.high %v447_v11, %v451_v13 }
  0x7f   :  { %3445 = vmatpush1.bf16.msra.mxu0 %v4255_v36  ;;  %3609 = vmatpush1.bf16.msra.mxu1 %v4257_v37  ;;  %v426_v36 = vld [vmem:[#allocation5 + $0x620] sm:$0xff]  ;;  %v423_v37 = vld [vmem:[#allocation5 + $0x608] sm:$0xff] }
  0x80   :  { %3446 = vmatprep.subr.bf16.mxu0 %v4264_v38  ;;  %3610 = vmatprep.subr.bf16.mxu1 %v4266_v40  ;;  %v427_v38 = vld [vmem:[#allocation5 + $0x628] sm:$0xff]  ;;  %v193_v40 = vadd.f32 %v99_v27, %v91_v26  ;;  %v4312_v45 = vcombine.high %v422_v35, %v426_v36  ;;  %v4311_v54 = vcombine.low %v422_v35, %v426_v36  ;;  %v458_v26 = vld [vmem:[#allocation5 + $0x720] sm:$0xff] }
  0x81   :  { %v455_v27 = vld [vmem:[#allocation5 + $0x708] sm:$0xff]  ;;  %v4337_v35 = vcombine.low %v447_v11, %v451_v13  ;;  %v4344_v36 = vcombine.high %v454_v30, %v458_v26  ;;  %v486_v13 = vld [vmem:[#allocation5 + $0x800] sm:$0xff] }
  0x82   :  { %v194_v53 = vrot.slane %v193_v40, 4 }
  0x83   :  { %3447 = vmatpush1.bf16.msra.mxu0 %v4263_v46  ;;  %3611 = vmatpush1.bf16.msra.mxu1 %v4265_v48  ;;  %v4314_v46 = vcombine.high %v423_v37, %v427_v38  ;;  %v430_v48 = vld [vmem:[#allocation5 + $0x640] sm:$0xff] }
  0x84   :  { %3448 = vmatprep.subr.bf16.mxu0 %v4272_v49  ;;  %3612 = vmatprep.subr.bf16.mxu1 %v4274_v50  ;;  %v434_v49 = vld [vmem:[#allocation5 + $0x660] sm:$0xff]  ;;  %v431_v50 = vld [vmem:[#allocation5 + $0x648] sm:$0xff] }
  0x85   :  { %v4322_v59 = vcombine.high %v431_v50, %v435_v51 }
  0x87   :  { %3449 = vmatpush1.bf16.msra.mxu0 %v4271_v55  ;;  %3613 = vmatpush1.bf16.msra.mxu1 %v4273_v56  ;;  %v118_v55 = vadd.f32 %v117_v42, %v116_v29  ;;  %v174_v56 = vadd.f32 %v173_v43, %v172_v31 }
  0x88   :  { %3450 = vmatprep.subr.bf16.mxu0 %v4280_v57  ;;  %3614 = vmatprep.subr.bf16.mxu1 %v4282_v58  ;;  %v4313_v57 = vcombine.low %v423_v37, %v427_v38  ;;  %v4320_v58 = vcombine.high %v430_v48, %v434_v49  ;;  %v462_v38 = vld [vmem:[#allocation5 + $0x740] sm:$0xff] }
  0x89   :  { %v119_v3 = vrot.slane %v118_v55, 2  ;;  %v175_v4 = vrot.slane %v174_v56, 2 }
  0x8b   :  { %3451 = vmatpush1.bf16.msra.mxu0 %v4279_v63  ;;  %3615 = vmatpush1.bf16.msra.mxu1 %v4281_v0  ;;  %v443_v63 = vld [vmem:[#allocation5 + $0x6a8] sm:$0xff]  ;;  %v139_v0 = vadd.f32 %v138_v52, %v137_v39  ;;  %v120_v24 = vadd.f32 %v119_v3, %v118_v55  ;;  %v176_v15 = vadd.f32 %v175_v4, %v174_v56  ;;  %v466_v39 = vld [vmem:[#allocation5 + $0x760] sm:$0xff] }
  0x8c   :  { %3452 = vmatprep.subr.bf16.mxu0 %v4288_v1  ;;  %3616 = vmatprep.subr.bf16.mxu1 %v4290_v2  ;;  %v195_v1 = vadd.f32 %v194_v53, %v193_v40  ;;  %v4319_v2 = vcombine.low %v430_v48, %v434_v49  ;;  %v4330_v7 = vcombine.high %v439_v62, %v443_v63  ;;  %v463_v40 = vld [vmem:[#allocation5 + $0x748] sm:$0xff]  ;;  %v474_v52 = vld [vmem:[#allocation5 + $0x7a0] sm:$0xff] }
  0x8d   :  { %v4329_v25 = vcombine.low %v439_v62, %v443_v63  ;;  %v4352_v49 = vcombine.high %v462_v38, %v466_v39  ;;  %v471_v53 = vld [vmem:[#allocation5 + $0x788] sm:$0xff]  ;;  %v478_v63 = vld [vmem:[#allocation5 + $0x7c0] sm:$0xff] }
  0x8f   :  { %3453 = vmatpush1.bf16.msra.mxu0 %v4287_v5  ;;  %3617 = vmatpush1.bf16.msra.mxu1 %v4289_v20  ;;  %v4321_v5 = vcombine.low %v431_v50, %v435_v51  ;;  %v140_v20 = vrot.slane %v139_v0, 2  ;;  %v470_v51 = vld [vmem:[#allocation5 + $0x780] sm:$0xff] }
  0x90   :  { %3454 = vmatprep.subr.bf16.mxu0 %v4296_v21  ;;  %3618 = vmatprep.subr.bf16.mxu1 %v4298_v23  ;;  %v196_v21 = vrot.slane %v195_v1, 2  ;;  %v4327_v23 = vcombine.low %v438_v60, %v442_v61  ;;  %v4360_v61 = vcombine.high %v470_v51, %v474_v52 }
  0x91   :  { %v141_v29 = vadd.f32 %v140_v20, %v139_v0  ;;  %v482_v0 = vld [vmem:[#allocation5 + $0x7e0] sm:$0xff] }
  0x92   :  { %v197_v31 = vadd.f32 %v196_v21, %v195_v1  ;;  %v479_v1 = vld [vmem:[#allocation5 + $0x7c8] sm:$0xff]  ;;  %v490_v20 = vld [vmem:[#allocation5 + $0x820] sm:$0xff] }
  0x93   :  { %3455 = vmatpush1.bf16.msra.mxu0 %v4295_v28  ;;  %3619 = vmatpush1.bf16.msra.mxu1 %v4297_v32  ;;  %v459_v28 = vld [vmem:[#allocation5 + $0x728] sm:$0xff]  ;;  %v4335_v32 = vcombine.low %v446_v9, %v450_v10  ;;  %v142_v42 = vrot.slane %v141_v29, 1  ;;  %v4368_v10 = vcombine.high %v478_v63, %v482_v0 }
  0x94   :  { %3456 = vmatprep.subr.bf16.mxu0 %v4304_v33  ;;  %3620 = vmatprep.subr.bf16.mxu1 %v4306_v34  ;;  %v121_v33 = vrot.slane %v120_v24, 1  ;;  %v177_v34 = vrot.slane %v176_v15, 1  ;;  %v4346_v37 = vcombine.high %v455_v27, %v459_v28  ;;  %v198_v43 = vrot.slane %v197_v31, 1  ;;  %v487_v21 = vld [vmem:[#allocation5 + $0x808] sm:$0xff] }
  0x95   :  { %v4345_v48 = vcombine.low %v455_v27, %v459_v28  ;;  %v143_v55 = vadd.f32 %v142_v42, %v141_v29  ;;  %v494_v27 = vld [vmem:[#allocation5 + $0x840] sm:$0xff]  ;;  %v507_v42 = vld [vmem:[#allocation5 + $0x8a8] sm:$0xff] }
  0x96   :  { %v199_v56 = vadd.f32 %v198_v43, %v197_v31  ;;  %v498_v28 = vld [vmem:[#allocation5 + $0x860] sm:$0xff]  ;;  %v495_v31 = vld [vmem:[#allocation5 + $0x848] sm:$0xff] }
  0x97   :  { %3457 = vmatpush1.bf16.msra.mxu0 %v4303_v41  ;;  %3621 = vmatpush1.bf16.msra.mxu1 %v4305_v44  ;;  %v467_v41 = vld [vmem:[#allocation5 + $0x768] sm:$0xff]  ;;  %v4343_v44 = vcombine.low %v454_v30, %v458_v26  ;;  %v219_v3 = vpack.c.bf16 %v143_v55, %v143_v55  ;;  %v4376_v30 = vcombine.high %v486_v13, %v490_v20 }
  0x98   :  { %3458 = vmatprep.subr.bf16.mxu0 %v4312_v45  ;;  %3622 = vmatprep.subr.bf16.mxu1 %v4314_v46  ;;  %v122_v45 = vadd.f32 %v121_v33, %v120_v24  ;;  %v178_v46 = vadd.f32 %v177_v34, %v176_v15  ;;  %v4354_v50 = vcombine.high %v463_v40, %v467_v41 }
  0x99   :  { %v4353_v60 = vcombine.low %v463_v40, %v467_v41  ;;  %v227_v4 = vpack.c.bf16 %v199_v56, %v199_v56  ;;  %v805_v24 = vunpack.c.l.b16 %v219_v3  ;;  %v4375_v34 = vcombine.low %v486_v13, %v490_v20  ;;  %v503_v41 = vld [vmem:[#allocation5 + $0x888] sm:$0xff]  ;;  %v518_v56 = vld [vmem:[#allocation5 + $0x900] sm:$0xff] }
  0x9a   :  { %v4383_v43 = vcombine.low %v494_v27, %v498_v28  ;;  %v531_v3 = vld [vmem:[#allocation5 + $0x968] sm:$0xff] }
  0x9b   :  { %3459 = vmatpush1.bf16.msra.mxu0 %v4311_v54  ;;  %3623 = vmatpush1.bf16.msra.mxu1 %v4313_v57  ;;  %v475_v54 = vld [vmem:[#allocation5 + $0x7a8] sm:$0xff]  ;;  %v4351_v57 = vcombine.low %v462_v38, %v466_v39  ;;  %v813_v15 = vunpack.c.l.b16 %v227_v4  ;;  %v502_v38 = vld [vmem:[#allocation5 + $0x880] sm:$0xff] }
  0x9c   :  { %3460 = vmatprep.subr.bf16.mxu0 %v4320_v58  ;;  %3624 = vmatprep.subr.bf16.mxu1 %v4322_v59  ;;  %v216_v58 = vpack.c.bf16 %v122_v45, %v122_v45  ;;  %v224_v59 = vpack.c.bf16 %v178_v46, %v178_v46  ;;  %v4362_v62 = vcombine.high %v471_v53, %v475_v54  ;;  %v506_v39 = vld [vmem:[#allocation5 + $0x8a0] sm:$0xff]  ;;  %v535_v13 = vld [vmem:[#allocation5 + $0x988] sm:$0xff] }
  0x9d   :  { %v4361_v9 = vcombine.low %v471_v53, %v475_v54  ;;  %v822_v33 = vsel %vm816_vm0, %v813_v15, %v805_v24  ;;  %v4392_v45 = vcombine.high %v502_v38, %v506_v39  ;;  %v4394_v46 = vcombine.high %v503_v41, %v507_v42  ;;  %v539_v20 = vld [vmem:[#allocation5 + $0x9a8] sm:$0xff] }
  0x9e   :  { %v4905_v40 = vpack.c.b16 %v822_v33, %v822_v33  ;;  %v4393_v53 = vcombine.low %v503_v41, %v507_v42  ;;  %v82_v24 = vunpack.c.l.bf16 %v4891_v14  ;;  %v90_v15 = vunpack.c.l.bf16 %v4893_v18  ;;  %v547_v14 = vld [vmem:[#allocation5 + $0x9e8] sm:$0xff]  ;;  %v550_v42 = vld [vmem:[#allocation5 + $0xa00] sm:$0xff] }
  0x9f   :  { %3461 = vmatpush1.bf16.msra.mxu0 %v4319_v2  ;;  %3625 = vmatpush1.bf16.msra.mxu1 %v4321_v5  ;;  %v483_v2 = vld [vmem:[#allocation5 + $0x7e8] sm:$0xff]  ;;  %v4359_v5 = vcombine.low %v470_v51, %v474_v52  ;;  %v4391_v52 = vcombine.low %v502_v38, %v506_v39  ;;  %v4425_v38 = vcombine.low %v535_v13, %v539_v20 }
  0xa0   :  { %3462 = vmatprep.subr.bf16.mxu0 %v4328_v6  ;;  %3626 = vmatprep.subr.bf16.mxu1 %v4330_v7  ;;  %v802_v6 = vunpack.c.l.b16 %v216_v58  ;;  %v810_v7 = vunpack.c.l.b16 %v224_v59  ;;  %v4370_v11 = vcombine.high %v479_v1, %v483_v2  ;;  %v515_v51 = vld [vmem:[#allocation5 + $0x8e8] sm:$0xff] }
  0xa1   :  { %v519_v58 = vld [vmem:[#allocation5 + $0x908] sm:$0xff] }
  0xa2   :  { %v523_v59 = vld [vmem:[#allocation5 + $0x928] sm:$0xff] }
  0xa3   :  { %3463 = vmatpush1.bf16.msra.mxu0 %v4327_v23  ;;  %3627 = vmatpush1.bf16.msra.mxu1 %v4329_v25  ;;  %v491_v23 = vld [vmem:[#allocation5 + $0x828] sm:$0xff]  ;;  %v4367_v25 = vcombine.low %v478_v63, %v482_v0  ;;  %v4410_v63 = vcombine.high %v519_v58, %v523_v59  ;;  %v526_v0 = vld [vmem:[#allocation5 + $0x940] sm:$0xff] }
  0xa4   :  { %3464 = vmatprep.subr.bf16.mxu0 %v4336_v16  ;;  %3628 = vmatprep.subr.bf16.mxu1 %v4338_v22  ;;  %v819_v16 = vsel %vm816_vm0, %v810_v7, %v802_v6  ;;  %v4369_v22 = vcombine.low %v479_v1, %v483_v2  ;;  %v4378_v26 = vcombine.high %v487_v21, %v491_v23  ;;  %v530_v1 = vld [vmem:[#allocation5 + $0x960] sm:$0xff]  ;;  %v527_v2 = vld [vmem:[#allocation5 + $0x948] sm:$0xff] }
  0xa5   :  { %v4902_v29 = vpack.c.b16 %v819_v16, %v819_v16  ;;  %v4416_v6 = vcombine.high %v526_v0, %v530_v1  ;;  %v4418_v7 = vcombine.high %v527_v2, %v531_v3  ;;  %v4917_v16 = vld [vmem:[#allocation2 + $0x38] sm:$0xff] }
  0xa7   :  { %3465 = vmatpush1.bf16.msra.mxu0 %v4335_v32  ;;  %3629 = vmatpush1.bf16.msra.mxu1 %v4337_v35  ;;  %v499_v32 = vld [vmem:[#allocation5 + $0x868] sm:$0xff]  ;;  %v4377_v35 = vcombine.low %v487_v21, %v491_v23  ;;  %v4911_v21 = vld [vmem:[#allocation2 + $0x18] sm:$0xff]  ;;  %v74_v23 = vunpack.c.l.bf16 %v4885_v8  ;;  %v546_v8 = vld [vmem:[#allocation5 + $0x9e0] sm:$0xff] }
  0xa8   :  { %3466 = vmatprep.subr.bf16.mxu0 %v4344_v36  ;;  %3630 = vmatprep.subr.bf16.mxu1 %v4346_v37  ;;  %v4384_v36 = vcombine.high %v494_v27, %v498_v28  ;;  %v4386_v37 = vcombine.high %v495_v31, %v499_v32  ;;  %v4426_v28 = vcombine.high %v535_v13, %v539_v20  ;;  %v77_v18 = vunpack.c.h.bf16 %v4911_v21 }
  0xab   :  { %3467 = vmatpush1.bf16.msra.mxu0 %v4343_v44  ;;  %3631 = vmatpush1.bf16.msra.mxu1 %v4345_v48  ;;  %v4385_v44 = vcombine.low %v495_v31, %v499_v32  ;;  %v510_v48 = vld [vmem:[#allocation5 + $0x8c0] sm:$0xff]  ;;  %v543_v32 = vld [vmem:[#allocation5 + $0x9c8] sm:$0xff] }
  0xac   :  { %3468 = vmatprep.subr.bf16.mxu0 %v4352_v49  ;;  %3632 = vmatprep.subr.bf16.mxu1 %v4354_v50  ;;  %v514_v49 = vld [vmem:[#allocation5 + $0x8e0] sm:$0xff]  ;;  %v511_v50 = vld [vmem:[#allocation5 + $0x8c8] sm:$0xff]  ;;  %v4434_v41 = vcombine.high %v543_v32, %v547_v14 }
  0xad   :  { %v4400_v54 = vcombine.high %v510_v48, %v514_v49  ;;  %v4402_v55 = vcombine.high %v511_v50, %v515_v51  ;;  %v542_v31 = vld [vmem:[#allocation5 + $0x9c0] sm:$0xff] }
  0xae   :  { %v4432_v39 = vcombine.high %v542_v31, %v546_v8 }
  0xaf   :  { %3469 = vmatpush1.bf16.msra.mxu0 %v4351_v57  ;;  %3633 = vmatpush1.bf16.msra.mxu1 %v4353_v60  ;;  %v522_v57 = vld [vmem:[#allocation5 + $0x920] sm:$0xff]  ;;  %v4399_v60 = vcombine.low %v510_v48, %v514_v49  ;;  %v4431_v49 = vcombine.low %v542_v31, %v546_v8 }
  0xb0   :  { %3470 = vmatprep.subr.bf16.mxu0 %v4360_v61  ;;  %3634 = vmatprep.subr.bf16.mxu1 %v4362_v62  ;;  %v4401_v61 = vcombine.low %v511_v50, %v515_v51  ;;  %v4408_v62 = vcombine.high %v518_v56, %v522_v57  ;;  %v4407_v4 = vcombine.low %v518_v56, %v522_v57  ;;  %v562_v56 = vld [vmem:[#allocation5 + $0xa60] sm:$0xff]  ;;  %v559_v57 = vld [vmem:[#allocation5 + $0xa48] sm:$0xff] }
  0xb3   :  { %3471 = vmatpush1.bf16.msra.mxu0 %v4359_v5  ;;  %3635 = vmatpush1.bf16.msra.mxu1 %v4361_v9  ;;  %v4409_v5 = vcombine.low %v519_v58, %v523_v59  ;;  %v534_v9 = vld [vmem:[#allocation5 + $0x980] sm:$0xff]  ;;  %v563_v58 = vld [vmem:[#allocation5 + $0xa68] sm:$0xff] }
  0xb4   :  { %3472 = vmatprep.subr.bf16.mxu0 %v4368_v10  ;;  %3636 = vmatprep.subr.bf16.mxu1 %v4370_v11  ;;  %v538_v10 = vld [vmem:[#allocation5 + $0x9a0] sm:$0xff]  ;;  %v4415_v11 = vcombine.low %v526_v0, %v530_v1  ;;  %v4449_v20 = vcombine.low %v559_v57, %v563_v58 }
  0xb5   :  { %v4424_v27 = vcombine.high %v534_v9, %v538_v10 }
  0xb7   :  { %3473 = vmatpush1.bf16.msra.mxu0 %v4367_v25  ;;  %3637 = vmatpush1.bf16.msra.mxu1 %v4369_v22  ;;  %v98_v25 = vunpack.c.l.bf16 %v4895_v19  ;;  %v4919_v22 = vld [vmem:[#allocation2 + $0x58] sm:$0xff]  ;;  %v85_v19 = vunpack.c.h.bf16 %v4917_v16 }
  0xb8   :  { %3483 = vmatprep.subr.bf16.mxu0 %v4376_v30  ;;  %3647 = vmatprep.subr.bf16.mxu1 %v4378_v26  ;;  %v4921_v30 = vld [vmem:[#allocation2 + $0x78] sm:$0xff]  ;;  %v4417_v26 = vcombine.low %v527_v2, %v531_v3  ;;  %v93_v33 = vunpack.c.h.bf16 %v4919_v22  ;;  %v4450_v2 = vcombine.high %v559_v57, %v563_v58  ;;  %v566_v3 = vld [vmem:[#allocation5 + $0xa80] sm:$0xff] }
  0xba   :  { %3475 = vmatmul.mubr.bf16.vlgmr.msra.gmra.mrb[0].mxu0 %v4902_v29  ;;  %3639 = vmatmul.mubr.bf16.vlgmr.msra.gmra.mrb[0].mxu1 %v4902_v29 }
  0xbb   :  { %3484 = vmatpush1.bf16.msra.mxu0 %v4375_v34  ;;  %3648 = vmatpush1.bf16.msra.mxu1 %v4377_v35  ;;  %v101_v34 = vunpack.c.h.bf16 %v4921_v30  ;;  %v4423_v35 = vcombine.low %v534_v9, %v538_v10 }
  0xbc   :  { %3485 = vmatprep.subr.bf16.mxu0 %v4384_v36  ;;  %3649 = vmatprep.subr.bf16.mxu1 %v4386_v37  ;;  %v130_v36 = vadd.f32 %v82_v24, %v74_v23  ;;  %v186_v37 = vadd.f32 %v98_v25, %v90_v15  ;;  %v574_v15 = vld [vmem:[#allocation5 + $0xac0] sm:$0xff] }
  0xbd   :  { %3515 = vmatprep.mubr.bf16.mxu0 %v4905_v40  ;;  %3679 = vmatprep.mubr.bf16.mxu1 %v4905_v40  ;;  %v207_v48 = vadd.f32 %v101_v34, %v93_v33  ;;  %v578_v25 = vld [vmem:[#allocation5 + $0xae0] sm:$0xff] }
  0xbe   :  { %v131_v50 = vrot.slane %v130_v36, 4  ;;  %v187_v51 = vrot.slane %v186_v37, 4  ;;  %v582_v34 = vld [vmem:[#allocation5 + $0xb00] sm:$0xff] }
  0xbf   :  { %3486 = vmatpush1.bf16.msra.mxu0 %v4383_v43  ;;  %3650 = vmatpush1.bf16.msra.mxu1 %v4385_v44  ;;  %v554_v43 = vld [vmem:[#allocation5 + $0xa20] sm:$0xff]  ;;  %v551_v44 = vld [vmem:[#allocation5 + $0xa08] sm:$0xff] }
  0xc0   :  { %3487 = vmatprep.subr.bf16.mxu0 %v4392_v45  ;;  %3651 = vmatprep.subr.bf16.mxu1 %v4394_v46  ;;  %v555_v45 = vld [vmem:[#allocation5 + $0xa28] sm:$0xff]  ;;  %v151_v46 = vadd.f32 %v85_v19, %v77_v18  ;;  %v4464_v19 = vcombine.high %v574_v15, %v578_v25 }
  0xc1   :  { %v4441_v0 = vcombine.low %v551_v44, %v555_v45 }
  0xc2   :  { %v152_v59 = vrot.slane %v151_v46, 4 }
  0xc3   :  { %3488 = vmatpush1.bf16.msra.mxu0 %v4391_v52  ;;  %3652 = vmatpush1.bf16.msra.mxu1 %v4393_v53  ;;  %v4433_v52 = vcombine.low %v543_v32, %v547_v14  ;;  %v4440_v53 = vcombine.high %v550_v42, %v554_v43 }
  0xc4   :  { %3489 = vmatprep.subr.bf16.mxu0 %v4400_v54  ;;  %3653 = vmatprep.subr.bf16.mxu1 %v4402_v55  ;;  %v4442_v54 = vcombine.high %v551_v44, %v555_v45  ;;  %v558_v55 = vld [vmem:[#allocation5 + $0xa40] sm:$0xff] }
  0xc5   :  { %v4448_v1 = vcombine.high %v558_v55, %v562_v56  ;;  %v4447_v10 = vcombine.low %v558_v55, %v562_v56 }
  0xc7   :  { %3490 = vmatpush1.bf16.msra.mxu0 %v4399_v60  ;;  %3654 = vmatpush1.bf16.msra.mxu1 %v4401_v61  ;;  %v208_v60 = vrot.slane %v207_v48, 4  ;;  %v4439_v61 = vcombine.low %v550_v42, %v554_v43 }
  0xc8   :  { %3491 = vmatprep.subr.bf16.mxu0 %v4408_v62  ;;  %3655 = vmatprep.subr.bf16.mxu1 %v4410_v63  ;;  %v132_v62 = vadd.f32 %v131_v50, %v130_v36  ;;  %v188_v63 = vadd.f32 %v187_v51, %v186_v37  ;;  %v583_v36 = vld [vmem:[#allocation5 + $0xb08] sm:$0xff] }
  0xc9   :  { %v209_v9 = vadd.f32 %v208_v60, %v207_v48  ;;  %v587_v37 = vld [vmem:[#allocation5 + $0xb28] sm:$0xff]  ;;  %v590_v48 = vld [vmem:[#allocation5 + $0xb40] sm:$0xff] }
  0xca   :  { %v189_v13 = vrot.slane %v188_v63, 2  ;;  %v591_v50 = vld [vmem:[#allocation5 + $0xb48] sm:$0xff]  ;;  %v4473_v57 = vcombine.low %v583_v36, %v587_v37  ;;  %v598_v60 = vld [vmem:[#allocation5 + $0xb80] sm:$0xff] }
  0xcb   :  { %3492 = vmatpush1.bf16.msra.mxu0 %v4407_v4  ;;  %3656 = vmatpush1.bf16.msra.mxu1 %v4409_v5  ;;  %v570_v4 = vld [vmem:[#allocation5 + $0xaa0] sm:$0xff]  ;;  %v567_v5 = vld [vmem:[#allocation5 + $0xa88] sm:$0xff]  ;;  %v210_v31 = vrot.slane %v209_v9, 2 }
  0xcc   :  { %3493 = vmatprep.subr.bf16.mxu0 %v4416_v6  ;;  %3657 = vmatprep.subr.bf16.mxu1 %v4418_v7  ;;  %v571_v6 = vld [vmem:[#allocation5 + $0xaa8] sm:$0xff]  ;;  %v153_v7 = vadd.f32 %v152_v59, %v151_v46  ;;  %v4456_v23 = vcombine.high %v566_v3, %v570_v4  ;;  %v4455_v8 = vcombine.low %v566_v3, %v570_v4 }
  0xcd   :  { %v4458_v24 = vcombine.high %v567_v5, %v571_v6  ;;  %v190_v14 = vadd.f32 %v189_v13, %v188_v63  ;;  %v4457_v18 = vcombine.low %v567_v5, %v571_v6  ;;  %v4474_v46 = vcombine.high %v583_v36, %v587_v37  ;;  %v595_v51 = vld [vmem:[#allocation5 + $0xb68] sm:$0xff] }
  0xce   :  { %v4482_v59 = vcombine.high %v591_v50, %v595_v51  ;;  %v603_v63 = vld [vmem:[#allocation5 + $0xba8] sm:$0xff]  ;;  %v4481_v5 = vcombine.low %v591_v50, %v595_v51  ;;  %v630_v50 = vld [vmem:[#allocation5 + $0xc80] sm:$0xff] }
  0xcf   :  { %3494 = vmatpush1.bf16.msra.mxu0 %v4415_v11  ;;  %3658 = vmatpush1.bf16.msra.mxu1 %v4417_v26  ;;  %v133_v11 = vrot.slane %v132_v62, 2  ;;  %v575_v26 = vld [vmem:[#allocation5 + $0xac8] sm:$0xff]  ;;  %v191_v43 = vrot.slane %v190_v14, 1  ;;  %v634_v51 = vld [vmem:[#allocation5 + $0xca0] sm:$0xff] }
  0xd0   :  { %3495 = vmatprep.subr.bf16.mxu0 %v4424_v27  ;;  %3659 = vmatprep.subr.bf16.mxu1 %v4426_v28  ;;  %v579_v27 = vld [vmem:[#allocation5 + $0xae8] sm:$0xff]  ;;  %v154_v28 = vrot.slane %v153_v7, 2 }
  0xd1   :  { %v134_v32 = vadd.f32 %v133_v11, %v132_v62  ;;  %v4466_v33 = vcombine.high %v575_v26, %v579_v27  ;;  %v4465_v44 = vcombine.low %v575_v26, %v579_v27  ;;  %v192_v56 = vadd.f32 %v191_v43, %v190_v14  ;;  %v599_v62 = vld [vmem:[#allocation5 + $0xb88] sm:$0xff] }
  0xd2   :  { %v607_v11 = vld [vmem:[#allocation5 + $0xbc8] sm:$0xff]  ;;  %v4489_v26 = vcombine.low %v599_v62, %v603_v63 }
  0xd3   :  { %3496 = vmatpush1.bf16.msra.mxu0 %v4423_v35  ;;  %3660 = vmatpush1.bf16.msra.mxu1 %v4425_v38  ;;  %v586_v35 = vld [vmem:[#allocation5 + $0xb20] sm:$0xff]  ;;  %v155_v38 = vadd.f32 %v154_v28, %v153_v7  ;;  %v135_v42 = vrot.slane %v134_v32, 1  ;;  %v226_v4 = vpack.c.bf16 %v192_v56, %v192_v56  ;;  %v4490_v7 = vcombine.high %v599_v62, %v603_v63  ;;  %v611_v13 = vld [vmem:[#allocation5 + $0xbe8] sm:$0xff] }
  0xd4   :  { %3497 = vmatprep.subr.bf16.mxu0 %v4432_v39  ;;  %3661 = vmatprep.subr.bf16.mxu1 %v4434_v41  ;;  %v211_v39 = vadd.f32 %v210_v31, %v209_v9  ;;  %v4463_v41 = vcombine.low %v574_v15, %v578_v25  ;;  %v4472_v45 = vcombine.high %v582_v34, %v586_v35  ;;  %v606_v9 = vld [vmem:[#allocation5 + $0xbc0] sm:$0xff]  ;;  %v619_v14 = vld [vmem:[#allocation5 + $0xc28] sm:$0xff] }
  0xd5   :  { %v136_v55 = vadd.f32 %v135_v42, %v134_v32  ;;  %v812_v25 = vunpack.c.l.b16 %v226_v4  ;;  %v4498_v28 = vcombine.high %v607_v11, %v611_v13  ;;  %v614_v31 = vld [vmem:[#allocation5 + $0xc00] sm:$0xff]  ;;  %v615_v32 = vld [vmem:[#allocation5 + $0xc08] sm:$0xff]  ;;  %v4519_v63 = vcombine.low %v630_v50, %v634_v51 }
  0xd6   :  { %v4506_v37 = vcombine.high %v615_v32, %v619_v14  ;;  %v623_v42 = vld [vmem:[#allocation5 + $0xc48] sm:$0xff]  ;;  %v650_v4 = vld [vmem:[#allocation5 + $0xd20] sm:$0xff] }
  0xd7   :  { %3498 = vmatpush1.bf16.msra.mxu0 %v4431_v49  ;;  %3662 = vmatpush1.bf16.msra.mxu1 %v4433_v52  ;;  %v594_v49 = vld [vmem:[#allocation5 + $0xb60] sm:$0xff]  ;;  %v156_v52 = vrot.slane %v155_v38, 1  ;;  %v218_v3 = vpack.c.bf16 %v136_v55, %v136_v55  ;;  %v627_v43 = vld [vmem:[#allocation5 + $0xc68] sm:$0xff] }
  0xd8   :  { %3499 = vmatprep.subr.bf16.mxu0 %v4440_v53  ;;  %3663 = vmatprep.subr.bf16.mxu1 %v4442_v54  ;;  %v212_v53 = vrot.slane %v211_v39, 1  ;;  %v4471_v54 = vcombine.low %v582_v34, %v586_v35  ;;  %v4480_v58 = vcombine.high %v590_v48, %v594_v49  ;;  %v4497_v35 = vcombine.low %v607_v11, %v611_v13  ;;  %v643_v62 = vld [vmem:[#allocation5 + $0xce8] sm:$0xff]  ;;  %v654_v13 = vld [vmem:[#allocation5 + $0xd40] sm:$0xff] }
  0xd9   :  { %v804_v15 = vunpack.c.l.b16 %v218_v3  ;;  %v4513_v56 = vcombine.low %v623_v42, %v627_v43  ;;  %v646_v3 = vld [vmem:[#allocation5 + $0xd00] sm:$0xff] }
  0xdb   :  { %3500 = vmatpush1.bf16.msra.mxu0 %v4439_v61  ;;  %3664 = vmatpush1.bf16.msra.mxu1 %v4441_v0  ;;  %v602_v61 = vld [vmem:[#allocation5 + $0xba0] sm:$0xff]  ;;  %v157_v0 = vadd.f32 %v156_v52, %v155_v38  ;;  %v821_v34 = vsel %vm816_vm0, %v812_v25, %v804_v15  ;;  %v4535_v15 = vcombine.low %v646_v3, %v650_v4 }
  0xdc   :  { %3501 = vmatprep.subr.bf16.mxu0 %v4448_v1  ;;  %3665 = vmatprep.subr.bf16.mxu1 %v4450_v2  ;;  %v213_v1 = vadd.f32 %v212_v53, %v211_v39  ;;  %v4479_v2 = vcombine.low %v590_v48, %v594_v49  ;;  %v4488_v6 = vcombine.high %v598_v60, %v602_v61  ;;  %v622_v38 = vld [vmem:[#allocation5 + $0xc40] sm:$0xff]  ;;  %v631_v53 = vld [vmem:[#allocation5 + $0xc88] sm:$0xff] }
  0xdd   :  { %v626_v39 = vld [vmem:[#allocation5 + $0xc60] sm:$0xff]  ;;  %v4514_v49 = vcombine.high %v623_v42, %v627_v43  ;;  %v671_v42 = vld [vmem:[#allocation5 + $0xdc8] sm:$0xff] }
  0xde   :  { %v4512_v48 = vcombine.high %v622_v38, %v626_v39  ;;  %v4511_v55 = vcombine.low %v622_v38, %v626_v39  ;;  %v670_v38 = vld [vmem:[#allocation5 + $0xdc0] sm:$0xff]  ;;  %v675_v43 = vld [vmem:[#allocation5 + $0xde8] sm:$0xff] }
  0xdf   :  { %3502 = vmatpush1.bf16.msra.mxu0 %v4447_v10  ;;  %3666 = vmatpush1.bf16.msra.mxu1 %v4449_v20  ;;  %v610_v10 = vld [vmem:[#allocation5 + $0xbe0] sm:$0xff]  ;;  %v221_v20 = vpack.c.bf16 %v157_v0, %v157_v0 }
  0xe0   :  { %3503 = vmatprep.subr.bf16.mxu0 %v4456_v23  ;;  %3667 = vmatprep.subr.bf16.mxu1 %v4458_v24  ;;  %v229_v23 = vpack.c.bf16 %v213_v1, %v213_v1  ;;  %v4487_v24 = vcombine.low %v598_v60, %v602_v61  ;;  %v4496_v27 = vcombine.high %v606_v9, %v610_v10  ;;  %v642_v60 = vld [vmem:[#allocation5 + $0xce0] sm:$0xff]  ;;  %v639_v61 = vld [vmem:[#allocation5 + $0xcc8] sm:$0xff] }
  0xe1   :  { %v674_v39 = vld [vmem:[#allocation5 + $0xde0] sm:$0xff] }
  0xe3   :  { %3504 = vmatpush1.bf16.msra.mxu0 %v4455_v8  ;;  %3668 = vmatpush1.bf16.msra.mxu1 %v4457_v18  ;;  %v618_v8 = vld [vmem:[#allocation5 + $0xc20] sm:$0xff]  ;;  %v807_v18 = vunpack.c.l.b16 %v221_v20 }
  0xe4   :  { %3505 = vmatprep.subr.bf16.mxu0 %v4464_v19  ;;  %3669 = vmatprep.subr.bf16.mxu1 %v4466_v33  ;;  %v815_v19 = vunpack.c.l.b16 %v229_v23  ;;  %v4495_v33 = vcombine.low %v606_v9, %v610_v10  ;;  %v4504_v36 = vcombine.high %v614_v31, %v618_v8  ;;  %v4529_v9 = vcombine.low %v639_v61, %v643_v62  ;;  %v658_v20 = vld [vmem:[#allocation5 + $0xd60] sm:$0xff]  ;;  %v655_v23 = vld [vmem:[#allocation5 + $0xd48] sm:$0xff] }
  0xe5   :  { %v4536_v10 = vcombine.high %v646_v3, %v650_v4  ;;  %v694_v4 = vld [vmem:[#allocation5 + $0xe80] sm:$0xff] }
  0xe7   :  { %3506 = vmatpush1.bf16.msra.mxu0 %v4463_v41  ;;  %3670 = vmatpush1.bf16.msra.mxu1 %v4465_v44  ;;  %v4928_v41 = vpack.c.b16 %v821_v34, %v821_v34  ;;  %v824_v44 = vsel %vm816_vm0, %v815_v19, %v807_v18  ;;  %v76_v18 = vunpack.c.l.bf16 %v4911_v21  ;;  %v84_v19 = vunpack.c.l.bf16 %v4917_v16 }
  0xe8   :  { %3507 = vmatprep.subr.bf16.mxu0 %v4472_v45  ;;  %3671 = vmatprep.subr.bf16.mxu1 %v4474_v46  ;;  %v4503_v45 = vcombine.low %v614_v31, %v618_v8  ;;  %v4505_v46 = vcombine.low %v615_v32, %v619_v14  ;;  %v4931_v52 = vpack.c.b16 %v824_v44, %v824_v44  ;;  %v666_v31 = vld [vmem:[#allocation5 + $0xda0] sm:$0xff]  ;;  %v663_v32 = vld [vmem:[#allocation5 + $0xd88] sm:$0xff]  ;;  %v100_v34 = vunpack.c.l.bf16 %v4921_v30 }
  0xe9   :  { %v4543_v8 = vcombine.low %v654_v13, %v658_v20  ;;  %v667_v14 = vld [vmem:[#allocation5 + $0xda8] sm:$0xff]  ;;  %v4562_v30 = vcombine.high %v671_v42, %v675_v43 }
  0xea   :  { %v4553_v16 = vcombine.low %v663_v32, %v667_v14 }
  0xeb   :  { %3508 = vmatpush1.bf16.msra.mxu0 %v4471_v54  ;;  %3672 = vmatpush1.bf16.msra.mxu1 %v4473_v57  ;;  %v635_v54 = vld [vmem:[#allocation5 + $0xca8] sm:$0xff]  ;;  %v4520_v57 = vcombine.high %v630_v50, %v634_v51  ;;  %v4559_v51 = vcombine.low %v670_v38, %v674_v39 }
  0xec   :  { %3509 = vmatprep.subr.bf16.mxu0 %v4480_v58  ;;  %3673 = vmatprep.subr.bf16.mxu1 %v4482_v59  ;;  %v4522_v58 = vcombine.high %v631_v53, %v635_v54  ;;  %v638_v59 = vld [vmem:[#allocation5 + $0xcc0] sm:$0xff]  ;;  %v4521_v0 = vcombine.low %v631_v53, %v635_v54  ;;  %v683_v50 = vld [vmem:[#allocation5 + $0xe28] sm:$0xff] }
  0xed   :  { %v4528_v1 = vcombine.high %v638_v59, %v642_v60 }
  0xef   :  { %3510 = vmatpush1.bf16.msra.mxu0 %v4479_v2  ;;  %3674 = vmatpush1.bf16.msra.mxu1 %v4481_v5  ;;  %v4530_v2 = vcombine.high %v639_v61, %v643_v62  ;;  %v647_v5 = vld [vmem:[#allocation5 + $0xd08] sm:$0xff] }
  0xf0   :  { %3511 = vmatprep.subr.bf16.mxu0 %v4488_v6  ;;  %3675 = vmatprep.subr.bf16.mxu1 %v4490_v7  ;;  %v651_v6 = vld [vmem:[#allocation5 + $0xd28] sm:$0xff]  ;;  %v4527_v7 = vcombine.low %v638_v59, %v642_v60  ;;  %v690_v59 = vld [vmem:[#allocation5 + $0xe60] sm:$0xff] }
  0xf1   :  { %v4538_v11 = vcombine.high %v647_v5, %v651_v6  ;;  %v4537_v25 = vcombine.low %v647_v5, %v651_v6  ;;  %v687_v60 = vld [vmem:[#allocation5 + $0xe48] sm:$0xff]  ;;  %v698_v5 = vld [vmem:[#allocation5 + $0xea0] sm:$0xff] }
  0xf2   :  { %v691_v61 = vld [vmem:[#allocation5 + $0xe68] sm:$0xff] }
  0xf3   :  { %3512 = vmatpush1.bf16.msra.mxu0 %v4487_v24  ;;  %3676 = vmatpush1.bf16.msra.mxu1 %v4489_v26  ;;  %v659_v24 = vld [vmem:[#allocation5 + $0xd68] sm:$0xff]  ;;  %v4544_v26 = vcombine.high %v654_v13, %v658_v20  ;;  %v4578_v3 = vcombine.high %v687_v60, %v691_v61  ;;  %v4577_v13 = vcombine.low %v687_v60, %v691_v61  ;;  %v734_v61 = vld [vmem:[#allocation5 + $0xfc0] sm:$0xff] }
  0xf4   :  { %3513 = vmatprep.subr.bf16.mxu0 %v4496_v27  ;;  %3677 = vmatprep.subr.bf16.mxu1 %v4498_v28  ;;  %v4546_v27 = vcombine.high %v655_v23, %v659_v24  ;;  %v662_v28 = vld [vmem:[#allocation5 + $0xd80] sm:$0xff]  ;;  %v695_v6 = vld [vmem:[#allocation5 + $0xe88] sm:$0xff]  ;;  %v4584_v20 = vcombine.high %v694_v4, %v698_v5 }
  0xf5   :  { %v4551_v44 = vcombine.low %v662_v28, %v666_v31 }
  0xf7   :  { %3514 = vmatpush1.bf16.msra.mxu0 %v4495_v33  ;;  %3678 = vmatpush1.bf16.msra.mxu1 %v4497_v35  ;;  %v92_v33 = vunpack.c.l.bf16 %v4919_v22  ;;  %v4545_v35 = vcombine.low %v655_v23, %v659_v24  ;;  %v4560_v22 = vcombine.high %v670_v38, %v674_v39  ;;  %v702_v24 = vld [vmem:[#allocation5 + $0xec0] sm:$0xff] }
  0xf8   :  { %3524 = vmatprep.subr.bf16.mxu0 %v4504_v36  ;;  %3688 = vmatprep.subr.bf16.mxu1 %v4506_v37  ;;  %v4552_v36 = vcombine.high %v662_v28, %v666_v31  ;;  %v4554_v37 = vcombine.high %v663_v32, %v667_v14 }
  0xf9   :  { %v200_v21 = vadd.f32 %v100_v34, %v92_v33  ;;  %v711_v33 = vld [vmem:[#allocation5 + $0xf08] sm:$0xff] }
  0xfa   :  { %3516 = vmatmul.mubr.bf16.vlgmr.msra.gmra.mrb[0].mxu0 %v4928_v41  ;;  %3680 = vmatmul.mubr.bf16.vlgmr.msra.gmra.mrb[0].mxu1 %v4928_v41  ;;  %v715_v34 = vld [vmem:[#allocation5 + $0xf28] sm:$0xff] }
  0xfb   :  { %3525 = vmatpush1.bf16.msra.mxu0 %v4503_v45  ;;  %3689 = vmatpush1.bf16.msra.mxu1 %v4505_v46  ;;  %v144_v45 = vadd.f32 %v84_v19, %v76_v18  ;;  %v678_v46 = vld [vmem:[#allocation5 + $0xe00] sm:$0xff]  ;;  %v201_v54 = vrot.slane %v200_v21, 4 }
  0xfc   :  { %3526 = vmatprep.subr.bf16.mxu0 %v4512_v48  ;;  %3690 = vmatprep.subr.bf16.mxu1 %v4514_v49  ;;  %v682_v48 = vld [vmem:[#allocation5 + $0xe20] sm:$0xff]  ;;  %v679_v49 = vld [vmem:[#allocation5 + $0xe08] sm:$0xff] }
  0xfd   :  { %3556 = vmatprep.mubr.bf16.mxu0 %v4931_v52  ;;  %3720 = vmatprep.mubr.bf16.mxu1 %v4931_v52  ;;  %v145_v53 = vrot.slane %v144_v45, 4  ;;  %v4567_v62 = vcombine.low %v678_v46, %v682_v48  ;;  %v710_v18 = vld [vmem:[#allocation5 + $0xf00] sm:$0xff] }
  0xfe   :  { %v714_v19 = vld [vmem:[#allocation5 + $0xf20] sm:$0xff] }
  0xff   :  { %3527 = vmatpush1.bf16.msra.mxu0 %v4511_v55  ;;  %3691 = vmatpush1.bf16.msra.mxu1 %v4513_v56  ;;  %v4561_v55 = vcombine.low %v671_v42, %v675_v43  ;;  %v4568_v56 = vcombine.high %v678_v46, %v682_v48  ;;  %v4600_v39 = vcombine.high %v710_v18, %v714_v19  ;;  %v718_v43 = vld [vmem:[#allocation5 + $0xf40] sm:$0xff] }
 0x100   :  { %3528 = vmatprep.subr.bf16.mxu0 %v4520_v57  ;;  %3692 = vmatprep.subr.bf16.mxu1 %v4522_v58  ;;  %v4570_v57 = vcombine.high %v679_v49, %v683_v50  ;;  %v686_v58 = vld [vmem:[#allocation5 + $0xe40] sm:$0xff]  ;;  %v4602_v42 = vcombine.high %v711_v33, %v715_v34  ;;  %v4601_v46 = vcombine.low %v711_v33, %v715_v34  ;;  %v252_v33 = vld [vmem:[#allocation5 + $0xb0] sm:$0xff]  ;;  %v249_v34 = vld [vmem:[#allocation5 + $0x98] sm:$0xff] }
 0x103   :  { %3529 = vmatpush1.bf16.msra.mxu0 %v4519_v63  ;;  %3693 = vmatpush1.bf16.msra.mxu1 %v4521_v0  ;;  %v146_v63 = vadd.f32 %v145_v53, %v144_v45  ;;  %v202_v0 = vadd.f32 %v201_v54, %v200_v21  ;;  %v719_v45 = vld [vmem:[#allocation5 + $0xf48] sm:$0xff] }
 0x104   :  { %3530 = vmatprep.subr.bf16.mxu0 %v4528_v1  ;;  %3694 = vmatprep.subr.bf16.mxu1 %v4530_v2  ;;  %v4569_v1 = vcombine.low %v679_v49, %v683_v50  ;;  %v4576_v2 = vcombine.high %v686_v58, %v690_v59  ;;  %v723_v21 = vld [vmem:[#allocation5 + $0xf68] sm:$0xff]  ;;  %v726_v50 = vld [vmem:[#allocation5 + $0xf80] sm:$0xff] }
 0x105   :  { %v4610_v49 = vcombine.high %v719_v45, %v723_v21  ;;  %v727_v53 = vld [vmem:[#allocation5 + $0xf88] sm:$0xff] }
 0x106   :  { %v731_v54 = vld [vmem:[#allocation5 + $0xfa8] sm:$0xff] }
 0x107   :  { %3531 = vmatpush1.bf16.msra.mxu0 %v4527_v7  ;;  %3695 = vmatpush1.bf16.msra.mxu1 %v4529_v9  ;;  %v699_v7 = vld [vmem:[#allocation5 + $0xea8] sm:$0xff]  ;;  %v4575_v9 = vcombine.low %v686_v58, %v690_v59  ;;  %v4609_v58 = vcombine.low %v719_v45, %v723_v21  ;;  %v4618_v60 = vcombine.high %v727_v53, %v731_v54  ;;  %v261_v45 = vld [vmem:[#allocation5 + $0xf8] sm:$0xff] }
 0x108   :  { %3532 = vmatprep.subr.bf16.mxu0 %v4536_v10  ;;  %3696 = vmatprep.subr.bf16.mxu1 %v4538_v11  ;;  %v147_v10 = vrot.slane %v146_v63, 2  ;;  %v203_v11 = vrot.slane %v202_v0, 2  ;;  %v4586_v23 = vcombine.high %v695_v6, %v699_v7 }
 0x10a   :  { %v148_v28 = vadd.f32 %v147_v10, %v146_v63  ;;  %v204_v31 = vadd.f32 %v203_v11, %v202_v0  ;;  %v735_v63 = vld [vmem:[#allocation5 + $0xfc8] sm:$0xff]  ;;  %v233_v10 = vld [vmem:[#allocation5 + $0x18] sm:$0xff] }
 0x10b   :  { %3533 = vmatpush1.bf16.msra.mxu0 %v4535_v15  ;;  %3697 = vmatpush1.bf16.msra.mxu1 %v4537_v25  ;;  %v706_v15 = vld [vmem:[#allocation5 + $0xee0] sm:$0xff]  ;;  %v703_v25 = vld [vmem:[#allocation5 + $0xec8] sm:$0xff]  ;;  %v237_v11 = vld [vmem:[#allocation5 + $0x38] sm:$0xff] }
 0x10c   :  { %3534 = vmatprep.subr.bf16.mxu0 %v4544_v26  ;;  %3698 = vmatprep.subr.bf16.mxu1 %v4546_v27  ;;  %v707_v26 = vld [vmem:[#allocation5 + $0xee8] sm:$0xff]  ;;  %v4583_v27 = vcombine.low %v694_v4, %v698_v5  ;;  %v4592_v32 = vcombine.high %v702_v24, %v706_v15  ;;  %v4617_v4 = vcombine.low %v727_v53, %v731_v54 }
 0x10d   :  { %v4594_v14 = vcombine.high %v703_v25, %v707_v26  ;;  %v4593_v38 = vcombine.low %v703_v25, %v707_v26  ;;  %v739_v0 = vld [vmem:[#allocation5 + $0xfe8] sm:$0xff]  ;;  %v240_v25 = vld [vmem:[#allocation5 + $0x50] sm:$0xff] }
 0x10e   :  { %v244_v26 = vld [vmem:[#allocation5 + $0x70] sm:$0xff] }
 0x10f   :  { %3535 = vmatpush1.bf16.msra.mxu0 %v4543_v8  ;;  %3699 = vmatpush1.bf16.msra.mxu1 %v4545_v35  ;;  %v4585_v8 = vcombine.low %v695_v6, %v699_v7  ;;  %v4591_v35 = vcombine.low %v702_v24, %v706_v15  ;;  %v4626_v6 = vcombine.high %v735_v63, %v739_v0  ;;  %v232_v7 = vld [vmem:[#allocation5 + $0x10] sm:$0xff] }
 0x110   :  { %3536 = vmatprep.subr.bf16.mxu0 %v4552_v36  ;;  %3700 = vmatprep.subr.bf16.mxu1 %v4554_v37  ;;  %v149_v36 = vrot.slane %v148_v28, 1  ;;  %v205_v37 = vrot.slane %v204_v31, 1  ;;  %v4126_v15 = vcombine.high %v233_v10, %v237_v11 }
 0x113   :  { %3537 = vmatpush1.bf16.msra.mxu0 %v4551_v44  ;;  %3701 = vmatpush1.bf16.msra.mxu1 %v4553_v16  ;;  %v722_v44 = vld [vmem:[#allocation5 + $0xf60] sm:$0xff]  ;;  %v4599_v16 = vcombine.low %v710_v18, %v714_v19  ;;  %v248_v19 = vld [vmem:[#allocation5 + $0x90] sm:$0xff] }
 0x114   :  { %3538 = vmatprep.subr.bf16.mxu0 %v4560_v22  ;;  %3702 = vmatprep.subr.bf16.mxu1 %v4562_v30  ;;  %v150_v22 = vadd.f32 %v149_v36, %v148_v28  ;;  %v206_v30 = vadd.f32 %v205_v37, %v204_v31  ;;  %v4608_v48 = vcombine.high %v718_v43, %v722_v44  ;;  %v241_v28 = vld [vmem:[#allocation5 + $0x58] sm:$0xff] }
 0x115   :  { %v245_v31 = vld [vmem:[#allocation5 + $0x78] sm:$0xff]  ;;  %v4131_v36 = vcombine.low %v240_v25, %v244_v26  ;;  %v4139_v21 = vcombine.low %v248_v19, %v252_v33 }
 0x116   :  { %v4134_v18 = vcombine.high %v241_v28, %v245_v31  ;;  %v4133_v37 = vcombine.low %v241_v28, %v245_v31  ;;  %v301_v28 = vld [vmem:[#allocation5 + $0x238] sm:$0xff] }
 0x117   :  { %3539 = vmatpush1.bf16.msra.mxu0 %v4559_v51  ;;  %3703 = vmatpush1.bf16.msra.mxu1 %v4561_v55  ;;  %v730_v51 = vld [vmem:[#allocation5 + $0xfa0] sm:$0xff]  ;;  %v4607_v55 = vcombine.low %v718_v43, %v722_v44  ;;  %v260_v43 = vld [vmem:[#allocation5 + $0xf0] sm:$0xff]  ;;  %v257_v44 = vld [vmem:[#allocation5 + $0xd8] sm:$0xff] }
 0x118   :  { %3540 = vmatprep.subr.bf16.mxu0 %v4568_v56  ;;  %3704 = vmatprep.subr.bf16.mxu1 %v4570_v57  ;;  %v220_v56 = vpack.c.bf16 %v150_v22, %v150_v22  ;;  %v228_v57 = vpack.c.bf16 %v206_v30, %v206_v30  ;;  %v4616_v59 = vcombine.high %v726_v50, %v730_v51 }
 0x119   :  { %v4150_v30 = vcombine.high %v257_v44, %v261_v45  ;;  %v4149_v53 = vcombine.low %v257_v44, %v261_v45  ;;  %v317_v44 = vld [vmem:[#allocation5 + $0x2b8] sm:$0xff] }
 0x11b   :  { %3541 = vmatpush1.bf16.msra.mxu0 %v4567_v62  ;;  %3705 = vmatpush1.bf16.msra.mxu1 %v4569_v1  ;;  %v738_v62 = vld [vmem:[#allocation5 + $0xfe0] sm:$0xff]  ;;  %v4615_v1 = vcombine.low %v726_v50, %v730_v51  ;;  %v269_v50 = vld [vmem:[#allocation5 + $0x138] sm:$0xff] }
 0x11c   :  { %3542 = vmatprep.subr.bf16.mxu0 %v4576_v2  ;;  %3706 = vmatprep.subr.bf16.mxu1 %v4578_v3  ;;  %v806_v2 = vunpack.c.l.b16 %v220_v56  ;;  %v814_v3 = vunpack.c.l.b16 %v228_v57  ;;  %v4624_v5 = vcombine.high %v734_v61, %v738_v62  ;;  %v276_v56 = vld [vmem:[#allocation5 + $0x170] sm:$0xff]  ;;  %v273_v57 = vld [vmem:[#allocation5 + $0x158] sm:$0xff] }
 0x11f   :  { %3543 = vmatpush1.bf16.msra.mxu0 %v4575_v9  ;;  %3707 = vmatpush1.bf16.msra.mxu1 %v4577_v13  ;;  %v236_v9 = vld [vmem:[#allocation5 + $0x30] sm:$0xff]  ;;  %v4623_v13 = vcombine.low %v734_v61, %v738_v62 }
 0x120   :  { %3544 = vmatprep.subr.bf16.mxu0 %v4584_v20  ;;  %3708 = vmatprep.subr.bf16.mxu1 %v4586_v23  ;;  %v823_v20 = vsel %vm816_vm0, %v814_v3, %v806_v2  ;;  %v4625_v23 = vcombine.low %v735_v63, %v739_v0  ;;  %v4124_v24 = vcombine.high %v232_v7, %v236_v9  ;;  %v280_v63 = vld [vmem:[#allocation5 + $0x190] sm:$0xff]  ;;  %v285_v2 = vld [vmem:[#allocation5 + $0x1b8] sm:$0xff] }
 0x121   :  { %v284_v0 = vld [vmem:[#allocation5 + $0x1b0] sm:$0xff] }
 0x123   :  { %3545 = vmatpush1.bf16.msra.mxu0 %v4583_v27  ;;  %3709 = vmatpush1.bf16.msra.mxu1 %v4585_v8  ;;  %v4942_v27 = vpack.c.b16 %v823_v20, %v823_v20  ;;  %v4123_v8 = vcombine.low %v232_v7, %v236_v9  ;;  %v288_v7 = vld [vmem:[#allocation5 + $0x1d0] sm:$0xff] }
 0x124   :  { %3546 = vmatprep.subr.bf16.mxu0 %v4592_v32  ;;  %3710 = vmatprep.subr.bf16.mxu1 %v4594_v14  ;;  %v4125_v32 = vcombine.low %v233_v10, %v237_v11  ;;  %v4132_v14 = vcombine.high %v240_v25, %v244_v26  ;;  %v292_v9 = vld [vmem:[#allocation5 + $0x1f0] sm:$0xff]  ;;  %v289_v10 = vld [vmem:[#allocation5 + $0x1d8] sm:$0xff] }
 0x125   :  { %v293_v11 = vld [vmem:[#allocation5 + $0x1f8] sm:$0xff]  ;;  %v300_v25 = vld [vmem:[#allocation5 + $0x230] sm:$0xff]  ;;  %v4179_v31 = vcombine.low %v288_v7, %v292_v9 }
 0x126   :  { %v297_v26 = vld [vmem:[#allocation5 + $0x218] sm:$0xff] }
 0x127   :  { %3547 = vmatpush1.bf16.msra.mxu0 %v4591_v35  ;;  %3711 = vmatpush1.bf16.msra.mxu1 %v4593_v38  ;;  %v253_v35 = vld [vmem:[#allocation5 + $0xb8] sm:$0xff]  ;;  %v4140_v38 = vcombine.high %v248_v19, %v252_v33  ;;  %v308_v19 = vld [vmem:[#allocation5 + $0x270] sm:$0xff] }
 0x128   :  { %3548 = vmatprep.subr.bf16.mxu0 %v4600_v39  ;;  %3712 = vmatprep.subr.bf16.mxu1 %v4602_v42  ;;  %v4142_v39 = vcombine.high %v249_v34, %v253_v35  ;;  %v256_v42 = vld [vmem:[#allocation5 + $0xd0] sm:$0xff]  ;;  %v305_v33 = vld [vmem:[#allocation5 + $0x258] sm:$0xff] }
 0x129   :  { %v4148_v22 = vcombine.high %v256_v42, %v260_v43  ;;  %v4147_v51 = vcombine.low %v256_v42, %v260_v43  ;;  %v316_v42 = vld [vmem:[#allocation5 + $0x2b0] sm:$0xff]  ;;  %v313_v43 = vld [vmem:[#allocation5 + $0x298] sm:$0xff] }
 0x12b   :  { %3549 = vmatpush1.bf16.msra.mxu0 %v4599_v16  ;;  %3713 = vmatpush1.bf16.msra.mxu1 %v4601_v46  ;;  %v4141_v16 = vcombine.low %v249_v34, %v253_v35  ;;  %v264_v46 = vld [vmem:[#allocation5 + $0x110] sm:$0xff]  ;;  %v309_v34 = vld [vmem:[#allocation5 + $0x278] sm:$0xff] }
 0x12c   :  { %3550 = vmatprep.subr.bf16.mxu0 %v4608_v48  ;;  %3714 = vmatprep.subr.bf16.mxu1 %v4610_v49  ;;  %v268_v48 = vld [vmem:[#allocation5 + $0x130] sm:$0xff]  ;;  %v265_v49 = vld [vmem:[#allocation5 + $0x118] sm:$0xff] }
 0x12d   :  { %v4156_v54 = vcombine.high %v264_v46, %v268_v48 }
 0x12f   :  { %3551 = vmatpush1.bf16.msra.mxu0 %v4607_v55  ;;  %3715 = vmatpush1.bf16.msra.mxu1 %v4609_v58  ;;  %v272_v55 = vld [vmem:[#allocation5 + $0x150] sm:$0xff]  ;;  %v277_v58 = vld [vmem:[#allocation5 + $0x178] sm:$0xff] }
 0x130   :  { %3552 = vmatprep.subr.bf16.mxu0 %v4616_v59  ;;  %3716 = vmatprep.subr.bf16.mxu1 %v4618_v60  ;;  %v4155_v59 = vcombine.low %v264_v46, %v268_v48  ;;  %v4157_v60 = vcombine.low %v265_v49, %v269_v50  ;;  %v4164_v61 = vcombine.high %v272_v55, %v276_v56  ;;  %v324_v46 = vld [vmem:[#allocation5 + $0x2f0] sm:$0xff]  ;;  %v321_v48 = vld [vmem:[#allocation5 + $0x2d8] sm:$0xff] }
 0x131   :  { %v4166_v62 = vcombine.high %v273_v57, %v277_v58  ;;  %v4163_v3 = vcombine.low %v272_v55, %v276_v56  ;;  %v332_v55 = vld [vmem:[#allocation5 + $0x330] sm:$0xff]  ;;  %v329_v56 = vld [vmem:[#allocation5 + $0x318] sm:$0xff] }
 0x133   :  { %3553 = vmatpush1.bf16.msra.mxu0 %v4615_v1  ;;  %3717 = vmatpush1.bf16.msra.mxu1 %v4617_v4  ;;  %v281_v1 = vld [vmem:[#allocation5 + $0x198] sm:$0xff]  ;;  %v4165_v4 = vcombine.low %v273_v57, %v277_v58 }
 0x134   :  { %3554 = vmatprep.subr.bf16.mxu0 %v4624_v5  ;;  %3718 = vmatprep.subr.bf16.mxu1 %v4626_v6  ;;  %v4172_v5 = vcombine.high %v280_v63, %v284_v0  ;;  %v4174_v6 = vcombine.high %v281_v1, %v285_v2  ;;  %v4173_v20 = vcombine.low %v281_v1, %v285_v2  ;;  %v333_v57 = vld [vmem:[#allocation5 + $0x338] sm:$0xff] }
 0x135   :  { %v341_v1 = vld [vmem:[#allocation5 + $0x378] sm:$0xff] }
 0x137   :  { %3555 = vmatpush1.bf16.msra.mxu0 %v4623_v13  ;;  %3719 = vmatpush1.bf16.msra.mxu1 %v4625_v23  ;;  %v4171_v13 = vcombine.low %v280_v63, %v284_v0  ;;  %v4180_v23 = vcombine.high %v288_v7, %v292_v9  ;;  %v340_v63 = vld [vmem:[#allocation5 + $0x370] sm:$0xff]  ;;  %v337_v0 = vld [vmem:[#allocation5 + $0x358] sm:$0xff] }
 0x138   :  { %3729 = vmatprep.subr.bf16.mxu0 %v4124_v24  ;;  %3893 = vmatprep.subr.bf16.mxu1 %v4126_v15  ;;  %v4182_v24 = vcombine.high %v289_v10, %v293_v11  ;;  %v296_v15 = vld [vmem:[#allocation5 + $0x210] sm:$0xff]  ;;  %v345_v9 = vld [vmem:[#allocation5 + $0x398] sm:$0xff] }
 0x139   :  { %v4187_v35 = vcombine.low %v296_v15, %v300_v25  ;;  %v348_v7 = vld [vmem:[#allocation5 + $0x3b0] sm:$0xff] }
 0x13a   :  { %3557 = vmatmul.mubr.bf16.vlgmr.msra.gmra.mrb[0].mxu0 %v4942_v27  ;;  %3721 = vmatmul.mubr.bf16.vlgmr.msra.gmra.mrb[0].mxu1 %v4942_v27 }
 0x13b   :  { %3730 = vmatpush1.bf16.msra.mxu0 %v4123_v8  ;;  %3894 = vmatpush1.bf16.msra.mxu1 %v4125_v32  ;;  %v4181_v8 = vcombine.low %v289_v10, %v293_v11  ;;  %v4188_v32 = vcombine.high %v296_v15, %v300_v25  ;;  %v349_v10 = vld [vmem:[#allocation5 + $0x3b8] sm:$0xff]  ;;  %v356_v15 = vld [vmem:[#allocation5 + $0x3f0] sm:$0xff] }
 0x13c   :  { %3731 = vmatprep.subr.bf16.mxu0 %v4132_v14  ;;  %3895 = vmatprep.subr.bf16.mxu1 %v4134_v18  ;;  %v4190_v14 = vcombine.high %v297_v26, %v301_v28  ;;  %v304_v18 = vld [vmem:[#allocation5 + $0x250] sm:$0xff]  ;;  %v353_v25 = vld [vmem:[#allocation5 + $0x3d8] sm:$0xff] }
 0x13d   :  { %3761 = vmatprep.mubr.bf16.mxu0 %v4859_v12  ;;  %3925 = vmatprep.mubr.bf16.mxu1 %v4859_v12  ;;  %v4158_v12 = vcombine.high %v265_v49, %v269_v50  ;;  %v4195_v45 = vcombine.low %v304_v18, %v308_v19  ;;  %v325_v49 = vld [vmem:[#allocation5 + $0x2f8] sm:$0xff] }
 0x13f   :  { %3732 = vmatpush1.bf16.msra.mxu0 %v4131_v36  ;;  %3896 = vmatpush1.bf16.msra.mxu1 %v4133_v37  ;;  %v4189_v36 = vcombine.low %v297_v26, %v301_v28  ;;  %v4196_v37 = vcombine.high %v304_v18, %v308_v19  ;;  %v357_v26 = vld [vmem:[#allocation5 + $0x3f8] sm:$0xff]  ;;  %v364_v18 = vld [vmem:[#allocation5 + $0x430] sm:$0xff] }
 0x140   :  { %3733 = vmatprep.subr.bf16.mxu0 %v4140_v38  ;;  %3897 = vmatprep.subr.bf16.mxu1 %v4142_v39  ;;  %v4198_v38 = vcombine.high %v305_v33, %v309_v34  ;;  %v312_v39 = vld [vmem:[#allocation5 + $0x290] sm:$0xff]  ;;  %v361_v19 = vld [vmem:[#allocation5 + $0x418] sm:$0xff] }
 0x141   :  { %v4203_v50 = vcombine.low %v312_v39, %v316_v42 }
 0x143   :  { %3734 = vmatpush1.bf16.msra.mxu0 %v4139_v21  ;;  %3898 = vmatpush1.bf16.msra.mxu1 %v4141_v16  ;;  %v4197_v21 = vcombine.low %v305_v33, %v309_v34  ;;  %v4204_v16 = vcombine.high %v312_v39, %v316_v42  ;;  %v365_v33 = vld [vmem:[#allocation5 + $0x438] sm:$0xff]  ;;  %v372_v39 = vld [vmem:[#allocation5 + $0x470] sm:$0xff] }
 0x144   :  { %3735 = vmatprep.subr.bf16.mxu0 %v4148_v22  ;;  %3899 = vmatprep.subr.bf16.mxu1 %v4150_v30  ;;  %v4206_v22 = vcombine.high %v313_v43, %v317_v44  ;;  %v320_v30 = vld [vmem:[#allocation5 + $0x2d0] sm:$0xff]  ;;  %v369_v42 = vld [vmem:[#allocation5 + $0x458] sm:$0xff] }
 0x145   :  { %v4211_v58 = vcombine.low %v320_v30, %v324_v46 }
 0x147   :  { %3736 = vmatpush1.bf16.msra.mxu0 %v4147_v51  ;;  %3900 = vmatpush1.bf16.msra.mxu1 %v4149_v53  ;;  %v4205_v51 = vcombine.low %v313_v43, %v317_v44  ;;  %v4212_v53 = vcombine.high %v320_v30, %v324_v46  ;;  %v373_v43 = vld [vmem:[#allocation5 + $0x478] sm:$0xff]  ;;  %v380_v30 = vld [vmem:[#allocation5 + $0x4b0] sm:$0xff] }
 0x148   :  { %3737 = vmatprep.subr.bf16.mxu0 %v4156_v54  ;;  %3901 = vmatprep.subr.bf16.mxu1 %v4158_v12  ;;  %v4214_v54 = vcombine.high %v321_v48, %v325_v49  ;;  %v328_v12 = vld [vmem:[#allocation5 + $0x310] sm:$0xff]  ;;  %v377_v46 = vld [vmem:[#allocation5 + $0x498] sm:$0xff] }
 0x149   :  { %v4219_v2 = vcombine.low %v328_v12, %v332_v55 }
 0x14b   :  { %3738 = vmatpush1.bf16.msra.mxu0 %v4155_v59  ;;  %3902 = vmatpush1.bf16.msra.mxu1 %v4157_v60  ;;  %v4213_v59 = vcombine.low %v321_v48, %v325_v49  ;;  %v4220_v60 = vcombine.high %v328_v12, %v332_v55  ;;  %v381_v48 = vld [vmem:[#allocation5 + $0x4b8] sm:$0xff]  ;;  %v388_v12 = vld [vmem:[#allocation5 + $0x4f0] sm:$0xff] }
 0x14c   :  { %3739 = vmatprep.subr.bf16.mxu0 %v4164_v61  ;;  %3903 = vmatprep.subr.bf16.mxu1 %v4166_v62  ;;  %v4222_v61 = vcombine.high %v329_v56, %v333_v57  ;;  %v336_v62 = vld [vmem:[#allocation5 + $0x350] sm:$0xff]  ;;  %v385_v55 = vld [vmem:[#allocation5 + $0x4d8] sm:$0xff] }
 0x14d   :  { %v4227_v11 = vcombine.low %v336_v62, %v340_v63 }
 0x14f   :  { %3740 = vmatpush1.bf16.msra.mxu0 %v4163_v3  ;;  %3904 = vmatpush1.bf16.msra.mxu1 %v4165_v4  ;;  %v4221_v3 = vcombine.low %v329_v56, %v333_v57  ;;  %v4228_v4 = vcombine.high %v336_v62, %v340_v63  ;;  %v389_v56 = vld [vmem:[#allocation5 + $0x4f8] sm:$0xff] }
 0x150   :  { %3741 = vmatprep.subr.bf16.mxu0 %v4172_v5  ;;  %3905 = vmatprep.subr.bf16.mxu1 %v4174_v6  ;;  %v4230_v5 = vcombine.high %v337_v0, %v341_v1  ;;  %v344_v6 = vld [vmem:[#allocation5 + $0x390] sm:$0xff]  ;;  %v393_v62 = vld [vmem:[#allocation5 + $0x518] sm:$0xff] }
 0x151   :  { %v4235_v28 = vcombine.low %v344_v6, %v348_v7  ;;  %v397_v63 = vld [vmem:[#allocation5 + $0x538] sm:$0xff] }
 0x153   :  { %3742 = vmatpush1.bf16.msra.mxu0 %v4171_v13  ;;  %3906 = vmatpush1.bf16.msra.mxu1 %v4173_v20  ;;  %v4229_v13 = vcombine.low %v337_v0, %v341_v1  ;;  %v4236_v20 = vcombine.high %v344_v6, %v348_v7  ;;  %v4277_v1 = vcombine.low %v385_v55, %v389_v56  ;;  %v405_v6 = vld [vmem:[#allocation5 + $0x578] sm:$0xff] }
 0x154   :  { %3743 = vmatprep.subr.bf16.mxu0 %v4180_v23  ;;  %3907 = vmatprep.subr.bf16.mxu1 %v4182_v24  ;;  %v4238_v23 = vcombine.high %v345_v9, %v349_v10  ;;  %v352_v24 = vld [vmem:[#allocation5 + $0x3d0] sm:$0xff] }
 0x155   :  { %v4243_v34 = vcombine.low %v352_v24, %v356_v15 }
 0x157   :  { %3744 = vmatpush1.bf16.msra.mxu0 %v4179_v31  ;;  %3908 = vmatpush1.bf16.msra.mxu1 %v4181_v8  ;;  %v4237_v31 = vcombine.low %v345_v9, %v349_v10  ;;  %v4244_v8 = vcombine.high %v352_v24, %v356_v15  ;;  %v4285_v9 = vcombine.low %v393_v62, %v397_v63  ;;  %v413_v24 = vld [vmem:[#allocation5 + $0x5b8] sm:$0xff] }
 0x158   :  { %3745 = vmatprep.subr.bf16.mxu0 %v4188_v32  ;;  %3909 = vmatprep.subr.bf16.mxu1 %v4190_v14  ;;  %v4246_v32 = vcombine.high %v353_v25, %v357_v26  ;;  %v360_v14 = vld [vmem:[#allocation5 + $0x410] sm:$0xff] }
 0x159   :  { %v4251_v44 = vcombine.low %v360_v14, %v364_v18 }
 0x15b   :  { %3746 = vmatpush1.bf16.msra.mxu0 %v4187_v35  ;;  %3910 = vmatpush1.bf16.msra.mxu1 %v4189_v36  ;;  %v4245_v35 = vcombine.low %v353_v25, %v357_v26  ;;  %v4252_v36 = vcombine.high %v360_v14, %v364_v18  ;;  %v421_v14 = vld [vmem:[#allocation5 + $0x5f8] sm:$0xff] }
 0x15c   :  { %3747 = vmatprep.subr.bf16.mxu0 %v4196_v37  ;;  %3911 = vmatprep.subr.bf16.mxu1 %v4198_v38  ;;  %v4254_v37 = vcombine.high %v361_v19, %v365_v33  ;;  %v368_v38 = vld [vmem:[#allocation5 + $0x450] sm:$0xff] }
 0x15d   :  { %v4259_v49 = vcombine.low %v368_v38, %v372_v39 }
 0x15f   :  { %3748 = vmatpush1.bf16.msra.mxu0 %v4195_v45  ;;  %3912 = vmatpush1.bf16.msra.mxu1 %v4197_v21  ;;  %v4253_v45 = vcombine.low %v361_v19, %v365_v33  ;;  %v4260_v21 = vcombine.high %v368_v38, %v372_v39  ;;  %v429_v38 = vld [vmem:[#allocation5 + $0x638] sm:$0xff] }
 0x160   :  { %3749 = vmatprep.subr.bf16.mxu0 %v4204_v16  ;;  %3913 = vmatprep.subr.bf16.mxu1 %v4206_v22  ;;  %v4262_v16 = vcombine.high %v369_v42, %v373_v43  ;;  %v376_v22 = vld [vmem:[#allocation5 + $0x490] sm:$0xff] }
 0x161   :  { %v4267_v57 = vcombine.low %v376_v22, %v380_v30 }
 0x163   :  { %3750 = vmatpush1.bf16.msra.mxu0 %v4203_v50  ;;  %3914 = vmatpush1.bf16.msra.mxu1 %v4205_v51  ;;  %v4261_v50 = vcombine.low %v369_v42, %v373_v43  ;;  %v4268_v51 = vcombine.high %v376_v22, %v380_v30  ;;  %v437_v22 = vld [vmem:[#allocation5 + $0x678] sm:$0xff] }
 0x164   :  { %3751 = vmatprep.subr.bf16.mxu0 %v4212_v53  ;;  %3915 = vmatprep.subr.bf16.mxu1 %v4214_v54  ;;  %v4270_v53 = vcombine.high %v377_v46, %v381_v48  ;;  %v384_v54 = vld [vmem:[#allocation5 + $0x4d0] sm:$0xff] }
 0x165   :  { %v4275_v0 = vcombine.low %v384_v54, %v388_v12 }
 0x167   :  { %3752 = vmatpush1.bf16.msra.mxu0 %v4211_v58  ;;  %3916 = vmatpush1.bf16.msra.mxu1 %v4213_v59  ;;  %v4276_v58 = vcombine.high %v384_v54, %v388_v12  ;;  %v4278_v59 = vcombine.high %v385_v55, %v389_v56  ;;  %v445_v54 = vld [vmem:[#allocation5 + $0x6b8] sm:$0xff] }
 0x168   :  { %3753 = vmatprep.subr.bf16.mxu0 %v4220_v60  ;;  %3917 = vmatprep.subr.bf16.mxu1 %v4222_v61  ;;  %v392_v60 = vld [vmem:[#allocation5 + $0x510] sm:$0xff] }
 0x169   :  { %v396_v61 = vld [vmem:[#allocation5 + $0x530] sm:$0xff] }
 0x16a   :  { %v4283_v7 = vcombine.low %v392_v60, %v396_v61 }
 0x16b   :  { %3754 = vmatpush1.bf16.msra.mxu0 %v4219_v2  ;;  %3918 = vmatpush1.bf16.msra.mxu1 %v4221_v3  ;;  %v4284_v2 = vcombine.high %v392_v60, %v396_v61  ;;  %v400_v3 = vld [vmem:[#allocation5 + $0x550] sm:$0xff]  ;;  %v453_v60 = vld [vmem:[#allocation5 + $0x6f8] sm:$0xff] }
 0x16c   :  { %3755 = vmatprep.subr.bf16.mxu0 %v4228_v4  ;;  %3919 = vmatprep.subr.bf16.mxu1 %v4230_v5  ;;  %v404_v4 = vld [vmem:[#allocation5 + $0x570] sm:$0xff]  ;;  %v401_v5 = vld [vmem:[#allocation5 + $0x558] sm:$0xff] }
 0x16d   :  { %v4292_v10 = vcombine.high %v400_v3, %v404_v4  ;;  %v4291_v15 = vcombine.low %v400_v3, %v404_v4  ;;  %v4293_v25 = vcombine.low %v401_v5, %v405_v6  ;;  %v461_v3 = vld [vmem:[#allocation5 + $0x738] sm:$0xff] }
 0x16f   :  { %3756 = vmatpush1.bf16.msra.mxu0 %v4227_v11  ;;  %3920 = vmatpush1.bf16.msra.mxu1 %v4229_v13  ;;  %v4294_v11 = vcombine.high %v401_v5, %v405_v6  ;;  %v408_v13 = vld [vmem:[#allocation5 + $0x590] sm:$0xff] }
 0x170   :  { %3757 = vmatprep.subr.bf16.mxu0 %v4236_v20  ;;  %3921 = vmatprep.subr.bf16.mxu1 %v4238_v23  ;;  %v412_v20 = vld [vmem:[#allocation5 + $0x5b0] sm:$0xff]  ;;  %v409_v23 = vld [vmem:[#allocation5 + $0x598] sm:$0xff] }
 0x171   :  { %v4300_v26 = vcombine.high %v408_v13, %v412_v20  ;;  %v4299_v18 = vcombine.low %v408_v13, %v412_v20  ;;  %v4301_v19 = vcombine.low %v409_v23, %v413_v24  ;;  %v469_v13 = vld [vmem:[#allocation5 + $0x778] sm:$0xff] }
 0x173   :  { %3758 = vmatpush1.bf16.msra.mxu0 %v4235_v28  ;;  %3922 = vmatpush1.bf16.msra.mxu1 %v4237_v31  ;;  %v4302_v28 = vcombine.high %v409_v23, %v413_v24  ;;  %v416_v31 = vld [vmem:[#allocation5 + $0x5d0] sm:$0xff] }
 0x174   :  { %3759 = vmatprep.subr.bf16.mxu0 %v4244_v8  ;;  %3923 = vmatprep.subr.bf16.mxu1 %v4246_v32  ;;  %v420_v8 = vld [vmem:[#allocation5 + $0x5f0] sm:$0xff]  ;;  %v417_v32 = vld [vmem:[#allocation5 + $0x5d8] sm:$0xff] }
 0x175   :  { %v4308_v33 = vcombine.high %v416_v31, %v420_v8  ;;  %v4307_v39 = vcombine.low %v416_v31, %v420_v8  ;;  %v4309_v42 = vcombine.low %v417_v32, %v421_v14  ;;  %v477_v31 = vld [vmem:[#allocation5 + $0x7b8] sm:$0xff] }
 0x177   :  { %3760 = vmatpush1.bf16.msra.mxu0 %v4243_v34  ;;  %3924 = vmatpush1.bf16.msra.mxu1 %v4245_v35  ;;  %v4310_v34 = vcombine.high %v417_v32, %v421_v14  ;;  %v424_v35 = vld [vmem:[#allocation5 + $0x610] sm:$0xff] }
 0x178   :  { %3770 = vmatprep.subr.bf16.mxu0 %v4252_v36  ;;  %3934 = vmatprep.subr.bf16.mxu1 %v4254_v37  ;;  %v428_v36 = vld [vmem:[#allocation5 + $0x630] sm:$0xff]  ;;  %v425_v37 = vld [vmem:[#allocation5 + $0x618] sm:$0xff] }
 0x179   :  { %v4316_v43 = vcombine.high %v424_v35, %v428_v36  ;;  %v4315_v30 = vcombine.low %v424_v35, %v428_v36  ;;  %v485_v35 = vld [vmem:[#allocation5 + $0x7f8] sm:$0xff] }
 0x17a   :  { %3762 = vmatmul.mubr.bf16.vlgmr.msra.gmra.mrb[4].mxu0 %v4876_v17  ;;  %3926 = vmatmul.mubr.bf16.vlgmr.msra.gmra.mrb[4].mxu1 %v4876_v17  ;;  %v4269_v17 = vcombine.low %v377_v46, %v381_v48  ;;  %v4317_v46 = vcombine.low %v425_v37, %v429_v38 }
 0x17b   :  { %3771 = vmatpush1.bf16.msra.mxu0 %v4251_v44  ;;  %3935 = vmatpush1.bf16.msra.mxu1 %v4253_v45  ;;  %v4318_v44 = vcombine.high %v425_v37, %v429_v38  ;;  %v432_v45 = vld [vmem:[#allocation5 + $0x650] sm:$0xff] }
 0x17c   :  { %3772 = vmatprep.subr.bf16.mxu0 %v4260_v21  ;;  %3936 = vmatprep.subr.bf16.mxu1 %v4262_v16  ;;  %v436_v21 = vld [vmem:[#allocation5 + $0x670] sm:$0xff]  ;;  %v433_v16 = vld [vmem:[#allocation5 + $0x658] sm:$0xff] }
 0x17d   :  { %3802 = vmatprep.mubr.bf16.mxu0 %v4881_v47  ;;  %3966 = vmatprep.mubr.bf16.mxu1 %v4881_v47  ;;  %v4286_v47 = vcombine.high %v393_v62, %v397_v63  ;;  %v4324_v48 = vcombine.high %v432_v45, %v436_v21  ;;  %v4323_v12 = vcombine.low %v432_v45, %v436_v21  ;;  %v493_v45 = vld [vmem:[#allocation5 + $0x838] sm:$0xff] }
 0x17e   :  { %v4325_v55 = vcombine.low %v433_v16, %v437_v22 }
 0x17f   :  { %3773 = vmatpush1.bf16.msra.mxu0 %v4259_v49  ;;  %3937 = vmatpush1.bf16.msra.mxu1 %v4261_v50  ;;  %v4326_v49 = vcombine.high %v433_v16, %v437_v22  ;;  %v440_v50 = vld [vmem:[#allocation5 + $0x690] sm:$0xff] }
 0x180   :  { %3774 = vmatprep.subr.bf16.mxu0 %v4268_v51  ;;  %3938 = vmatprep.subr.bf16.mxu1 %v4270_v53  ;;  %v444_v51 = vld [vmem:[#allocation5 + $0x6b0] sm:$0xff]  ;;  %v441_v53 = vld [vmem:[#allocation5 + $0x698] sm:$0xff] }
 0x181   :  { %v4332_v56 = vcombine.high %v440_v50, %v444_v51  ;;  %v4331_v61 = vcombine.low %v440_v50, %v444_v51  ;;  %v4333_v62 = vcombine.low %v441_v53, %v445_v54  ;;  %v501_v50 = vld [vmem:[#allocation5 + $0x878] sm:$0xff] }
 0x183   :  { %3775 = vmatpush1.bf16.msra.mxu0 %v4267_v57  ;;  %3939 = vmatpush1.bf16.msra.mxu1 %v4269_v17  ;;  %v4334_v57 = vcombine.high %v441_v53, %v445_v54  ;;  %v448_v17 = vld [vmem:[#allocation5 + $0x6d0] sm:$0xff] }
 0x184   :  { %3776 = vmatprep.subr.bf16.mxu0 %v4276_v58  ;;  %3940 = vmatprep.subr.bf16.mxu1 %v4278_v59  ;;  %v452_v58 = vld [vmem:[#allocation5 + $0x6f0] sm:$0xff]  ;;  %v449_v59 = vld [vmem:[#allocation5 + $0x6d8] sm:$0xff] }
 0x185   :  { %v4340_v63 = vcombine.high %v448_v17, %v452_v58  ;;  %v4339_v4 = vcombine.low %v448_v17, %v452_v58  ;;  %v4341_v5 = vcombine.low %v449_v59, %v453_v60  ;;  %v509_v17 = vld [vmem:[#allocation5 + $0x8b8] sm:$0xff] }
 0x187   :  { %3777 = vmatpush1.bf16.msra.mxu0 %v4275_v0  ;;  %3941 = vmatpush1.bf16.msra.mxu1 %v4277_v1  ;;  %v4342_v0 = vcombine.high %v449_v59, %v453_v60  ;;  %v456_v1 = vld [vmem:[#allocation5 + $0x710] sm:$0xff] }
 0x188   :  { %3778 = vmatprep.subr.bf16.mxu0 %v4284_v2  ;;  %3942 = vmatprep.subr.bf16.mxu1 %v4286_v47  ;;  %v460_v2 = vld [vmem:[#allocation5 + $0x730] sm:$0xff]  ;;  %v457_v47 = vld [vmem:[#allocation5 + $0x718] sm:$0xff] }
 0x189   :  { %v4348_v6 = vcombine.high %v456_v1, %v460_v2  ;;  %v4347_v20 = vcombine.low %v456_v1, %v460_v2  ;;  %v4349_v23 = vcombine.low %v457_v47, %v461_v3  ;;  %v517_v1 = vld [vmem:[#allocation5 + $0x8f8] sm:$0xff] }
 0x18b   :  { %3779 = vmatpush1.bf16.msra.mxu0 %v4283_v7  ;;  %3943 = vmatpush1.bf16.msra.mxu1 %v4285_v9  ;;  %v4350_v7 = vcombine.high %v457_v47, %v461_v3  ;;  %v464_v9 = vld [vmem:[#allocation5 + $0x750] sm:$0xff] }
 0x18c   :  { %3780 = vmatprep.subr.bf16.mxu0 %v4292_v10  ;;  %3944 = vmatprep.subr.bf16.mxu1 %v4294_v11  ;;  %v468_v10 = vld [vmem:[#allocation5 + $0x770] sm:$0xff]  ;;  %v465_v11 = vld [vmem:[#allocation5 + $0x758] sm:$0xff] }
 0x18d   :  { %v4356_v24 = vcombine.high %v464_v9, %v468_v10  ;;  %v4355_v8 = vcombine.low %v464_v9, %v468_v10  ;;  %v4357_v32 = vcombine.low %v465_v11, %v469_v13 }
 0x18f   :  { %3781 = vmatpush1.bf16.msra.mxu0 %v4291_v15  ;;  %3945 = vmatpush1.bf16.msra.mxu1 %v4293_v25  ;;  %v4358_v15 = vcombine.high %v465_v11, %v469_v13  ;;  %v472_v25 = vld [vmem:[#allocation5 + $0x790] sm:$0xff] }
 0x190   :  { %3782 = vmatprep.subr.bf16.mxu0 %v4300_v26  ;;  %3946 = vmatprep.subr.bf16.mxu1 %v4302_v28  ;;  %v476_v26 = vld [vmem:[#allocation5 + $0x7b0] sm:$0xff]  ;;  %v473_v28 = vld [vmem:[#allocation5 + $0x798] sm:$0xff] }
 0x191   :  { %v4364_v14 = vcombine.high %v472_v25, %v476_v26  ;;  %v4363_v36 = vcombine.low %v472_v25, %v476_v26  ;;  %v4365_v37 = vcombine.low %v473_v28, %v477_v31  ;;  %v528_v13 = vld [vmem:[#allocation5 + $0x950] sm:$0xff] }
 0x193   :  { %3783 = vmatpush1.bf16.msra.mxu0 %v4299_v18  ;;  %3947 = vmatpush1.bf16.msra.mxu1 %v4301_v19  ;;  %v4366_v18 = vcombine.high %v473_v28, %v477_v31  ;;  %v480_v19 = vld [vmem:[#allocation5 + $0x7d0] sm:$0xff] }
 0x194   :  { %3784 = vmatprep.subr.bf16.mxu0 %v4308_v33  ;;  %3948 = vmatprep.subr.bf16.mxu1 %v4310_v34  ;;  %v484_v33 = vld [vmem:[#allocation5 + $0x7f0] sm:$0xff]  ;;  %v481_v34 = vld [vmem:[#allocation5 + $0x7d8] sm:$0xff] }
 0x195   :  { %v4372_v38 = vcombine.high %v480_v19, %v484_v33  ;;  %v4371_v21 = vcombine.low %v480_v19, %v484_v33  ;;  %v4373_v16 = vcombine.low %v481_v34, %v485_v35  ;;  %v536_v31 = vld [vmem:[#allocation5 + $0x990] sm:$0xff] }
 0x197   :  { %3785 = vmatpush1.bf16.msra.mxu0 %v4307_v39  ;;  %3949 = vmatpush1.bf16.msra.mxu1 %v4309_v42  ;;  %v4374_v39 = vcombine.high %v481_v34, %v485_v35  ;;  %v488_v42 = vld [vmem:[#allocation5 + $0x810] sm:$0xff] }
 0x198   :  { %3786 = vmatprep.subr.bf16.mxu0 %v4316_v43  ;;  %3950 = vmatprep.subr.bf16.mxu1 %v4318_v44  ;;  %v492_v43 = vld [vmem:[#allocation5 + $0x830] sm:$0xff]  ;;  %v489_v44 = vld [vmem:[#allocation5 + $0x818] sm:$0xff] }
 0x199   :  { %v4380_v22 = vcombine.high %v488_v42, %v492_v43  ;;  %v4379_v51 = vcombine.low %v488_v42, %v492_v43  ;;  %v4381_v53 = vcombine.low %v489_v44, %v493_v45  ;;  %v544_v35 = vld [vmem:[#allocation5 + $0x9d0] sm:$0xff] }
 0x19b   :  { %3787 = vmatpush1.bf16.msra.mxu0 %v4315_v30  ;;  %3951 = vmatpush1.bf16.msra.mxu1 %v4317_v46  ;;  %v4382_v30 = vcombine.high %v489_v44, %v493_v45  ;;  %v496_v46 = vld [vmem:[#allocation5 + $0x850] sm:$0xff] }
 0x19c   :  { %3788 = vmatprep.subr.bf16.mxu0 %v4324_v48  ;;  %3952 = vmatprep.subr.bf16.mxu1 %v4326_v49  ;;  %v500_v48 = vld [vmem:[#allocation5 + $0x870] sm:$0xff]  ;;  %v497_v49 = vld [vmem:[#allocation5 + $0x858] sm:$0xff] }
 0x19d   :  { %v4388_v54 = vcombine.high %v496_v46, %v500_v48  ;;  %v4387_v58 = vcombine.low %v496_v46, %v500_v48  ;;  %v4389_v59 = vcombine.low %v497_v49, %v501_v50  ;;  %v552_v45 = vld [vmem:[#allocation5 + $0xa10] sm:$0xff] }
 0x19f   :  { %3789 = vmatpush1.bf16.msra.mxu0 %v4323_v12  ;;  %3953 = vmatpush1.bf16.msra.mxu1 %v4325_v55  ;;  %v4390_v12 = vcombine.high %v497_v49, %v501_v50  ;;  %v504_v55 = vld [vmem:[#allocation5 + $0x890] sm:$0xff] }
 0x1a0   :  { %3790 = vmatprep.subr.bf16.mxu0 %v4332_v56  ;;  %3954 = vmatprep.subr.bf16.mxu1 %v4334_v57  ;;  %v508_v56 = vld [vmem:[#allocation5 + $0x8b0] sm:$0xff]  ;;  %v505_v57 = vld [vmem:[#allocation5 + $0x898] sm:$0xff] }
 0x1a1   :  { %v4396_v60 = vcombine.high %v504_v55, %v508_v56  ;;  %v4395_v2 = vcombine.low %v504_v55, %v508_v56  ;;  %v560_v50 = vld [vmem:[#allocation5 + $0xa50] sm:$0xff] }
 0x1a3   :  { %3791 = vmatpush1.bf16.msra.mxu0 %v4331_v61  ;;  %3955 = vmatpush1.bf16.msra.mxu1 %v4333_v62  ;;  %v4398_v61 = vcombine.high %v505_v57, %v509_v17  ;;  %v512_v62 = vld [vmem:[#allocation5 + $0x8d0] sm:$0xff] }
 0x1a4   :  { %3792 = vmatprep.subr.bf16.mxu0 %v4340_v63  ;;  %3956 = vmatprep.subr.bf16.mxu1 %v4342_v0  ;;  %v516_v63 = vld [vmem:[#allocation5 + $0x8f0] sm:$0xff]  ;;  %v513_v0 = vld [vmem:[#allocation5 + $0x8d8] sm:$0xff] }
 0x1a5   :  { %v4404_v47 = vcombine.high %v512_v62, %v516_v63  ;;  %v4406_v3 = vcombine.high %v513_v0, %v517_v1  ;;  %v4403_v9 = vcombine.low %v512_v62, %v516_v63  ;;  %v4405_v10 = vcombine.low %v513_v0, %v517_v1  ;;  %v576_v1 = vld [vmem:[#allocation5 + $0xad0] sm:$0xff] }
 0x1a7   :  { %3793 = vmatpush1.bf16.msra.mxu0 %v4339_v4  ;;  %3957 = vmatpush1.bf16.msra.mxu1 %v4341_v5  ;;  %v520_v4 = vld [vmem:[#allocation5 + $0x910] sm:$0xff] }
 0x1a8   :  { %3794 = vmatprep.subr.bf16.mxu0 %v4348_v6  ;;  %3958 = vmatprep.subr.bf16.mxu1 %v4350_v7  ;;  %v524_v5 = vld [vmem:[#allocation5 + $0x930] sm:$0xff]  ;;  %v521_v6 = vld [vmem:[#allocation5 + $0x918] sm:$0xff] }
 0x1a9   :  { %v525_v7 = vld [vmem:[#allocation5 + $0x938] sm:$0xff]  ;;  %v4412_v11 = vcombine.high %v520_v4, %v524_v5 }
 0x1aa   :  { %v4413_v25 = vcombine.low %v521_v6, %v525_v7 }
 0x1ab   :  { %3795 = vmatpush1.bf16.msra.mxu0 %v4347_v20  ;;  %3959 = vmatpush1.bf16.msra.mxu1 %v4349_v23  ;;  %v532_v20 = vld [vmem:[#allocation5 + $0x970] sm:$0xff]  ;;  %v529_v23 = vld [vmem:[#allocation5 + $0x958] sm:$0xff] }
 0x1ac   :  { %3796 = vmatprep.subr.bf16.mxu0 %v4356_v24  ;;  %3960 = vmatprep.subr.bf16.mxu1 %v4358_v15  ;;  %v533_v24 = vld [vmem:[#allocation5 + $0x978] sm:$0xff]  ;;  %v4411_v15 = vcombine.low %v520_v4, %v524_v5  ;;  %v4420_v26 = vcombine.high %v528_v13, %v532_v20 }
 0x1ad   :  { %v4422_v28 = vcombine.high %v529_v23, %v533_v24  ;;  %v4421_v19 = vcombine.low %v529_v23, %v533_v24  ;;  %v592_v24 = vld [vmem:[#allocation5 + $0xb50] sm:$0xff] }
 0x1af   :  { %3797 = vmatpush1.bf16.msra.mxu0 %v4355_v8  ;;  %3961 = vmatpush1.bf16.msra.mxu1 %v4357_v32  ;;  %v540_v8 = vld [vmem:[#allocation5 + $0x9b0] sm:$0xff]  ;;  %v537_v32 = vld [vmem:[#allocation5 + $0x998] sm:$0xff] }
 0x1b0   :  { %3798 = vmatprep.subr.bf16.mxu0 %v4364_v14  ;;  %3962 = vmatprep.subr.bf16.mxu1 %v4366_v18  ;;  %v541_v14 = vld [vmem:[#allocation5 + $0x9b8] sm:$0xff]  ;;  %v4419_v18 = vcombine.low %v528_v13, %v532_v20  ;;  %v4428_v33 = vcombine.high %v536_v31, %v540_v8 }
 0x1b1   :  { %v4430_v34 = vcombine.high %v537_v32, %v541_v14  ;;  %v4429_v42 = vcombine.low %v537_v32, %v541_v14  ;;  %v600_v14 = vld [vmem:[#allocation5 + $0xb90] sm:$0xff] }
 0x1b3   :  { %3799 = vmatpush1.bf16.msra.mxu0 %v4363_v36  ;;  %3963 = vmatpush1.bf16.msra.mxu1 %v4365_v37  ;;  %v548_v36 = vld [vmem:[#allocation5 + $0x9f0] sm:$0xff]  ;;  %v545_v37 = vld [vmem:[#allocation5 + $0x9d8] sm:$0xff] }
 0x1b4   :  { %3800 = vmatprep.subr.bf16.mxu0 %v4372_v38  ;;  %3964 = vmatprep.subr.bf16.mxu1 %v4374_v39  ;;  %v549_v38 = vld [vmem:[#allocation5 + $0x9f8] sm:$0xff]  ;;  %v4427_v39 = vcombine.low %v536_v31, %v540_v8  ;;  %v4436_v43 = vcombine.high %v544_v35, %v548_v36 }
 0x1b5   :  { %v4438_v44 = vcombine.high %v545_v37, %v549_v38  ;;  %v4437_v46 = vcombine.low %v545_v37, %v549_v38  ;;  %v608_v38 = vld [vmem:[#allocation5 + $0xbd0] sm:$0xff] }
 0x1b7   :  { %3801 = vmatpush1.bf16.msra.mxu0 %v4371_v21  ;;  %3965 = vmatpush1.bf16.msra.mxu1 %v4373_v16  ;;  %v556_v21 = vld [vmem:[#allocation5 + $0xa30] sm:$0xff]  ;;  %v553_v16 = vld [vmem:[#allocation5 + $0xa18] sm:$0xff] }
 0x1b8   :  { %3811 = vmatprep.subr.bf16.mxu0 %v4380_v22  ;;  %3975 = vmatprep.subr.bf16.mxu1 %v4382_v30  ;;  %v557_v22 = vld [vmem:[#allocation5 + $0xa38] sm:$0xff]  ;;  %v4435_v30 = vcombine.low %v544_v35, %v548_v36  ;;  %v4444_v48 = vcombine.high %v552_v45, %v556_v21 }
 0x1b9   :  { %v4446_v49 = vcombine.high %v553_v16, %v557_v22  ;;  %v4445_v55 = vcombine.low %v553_v16, %v557_v22  ;;  %v616_v22 = vld [vmem:[#allocation5 + $0xc10] sm:$0xff] }
 0x1ba   :  { %3803 = vmatmul.mubr.bf16.vlgmr.msra.gmra.mrb[4].mxu0 %v4902_v29  ;;  %3967 = vmatmul.mubr.bf16.vlgmr.msra.gmra.mrb[4].mxu1 %v4902_v29  ;;  %v4397_v29 = vcombine.low %v505_v57, %v509_v17  ;;  %v568_v17 = vld [vmem:[#allocation5 + $0xa90] sm:$0xff] }
 0x1bb   :  { %3812 = vmatpush1.bf16.msra.mxu0 %v4379_v51  ;;  %3976 = vmatpush1.bf16.msra.mxu1 %v4381_v53  ;;  %v564_v51 = vld [vmem:[#allocation5 + $0xa70] sm:$0xff]  ;;  %v561_v53 = vld [vmem:[#allocation5 + $0xa58] sm:$0xff] }
 0x1bc   :  { %3813 = vmatprep.subr.bf16.mxu0 %v4388_v54  ;;  %3977 = vmatprep.subr.bf16.mxu1 %v4390_v12  ;;  %v565_v54 = vld [vmem:[#allocation5 + $0xa78] sm:$0xff]  ;;  %v4443_v12 = vcombine.low %v552_v45, %v556_v21  ;;  %v4452_v56 = vcombine.high %v560_v50, %v564_v51 }
 0x1bd   :  { %3843 = vmatprep.mubr.bf16.mxu0 %v4905_v40  ;;  %4007 = vmatprep.mubr.bf16.mxu1 %v4905_v40  ;;  %v4414_v40 = vcombine.high %v521_v6, %v525_v7  ;;  %v4454_v57 = vcombine.high %v561_v53, %v565_v54  ;;  %v4453_v62 = vcombine.low %v561_v53, %v565_v54  ;;  %v584_v7 = vld [vmem:[#allocation5 + $0xb10] sm:$0xff] }
 0x1be   :  { %v624_v54 = vld [vmem:[#allocation5 + $0xc50] sm:$0xff] }
 0x1bf   :  { %3814 = vmatpush1.bf16.msra.mxu0 %v4387_v58  ;;  %3978 = vmatpush1.bf16.msra.mxu1 %v4389_v59  ;;  %v572_v58 = vld [vmem:[#allocation5 + $0xab0] sm:$0xff]  ;;  %v569_v59 = vld [vmem:[#allocation5 + $0xa98] sm:$0xff] }
 0x1c0   :  { %3815 = vmatprep.subr.bf16.mxu0 %v4396_v60  ;;  %3979 = vmatprep.subr.bf16.mxu1 %v4398_v61  ;;  %v573_v60 = vld [vmem:[#allocation5 + $0xab8] sm:$0xff]  ;;  %v4451_v61 = vcombine.low %v560_v50, %v564_v51  ;;  %v4460_v63 = vcombine.high %v568_v17, %v572_v58 }
 0x1c1   :  { %v4462_v0 = vcombine.high %v569_v59, %v573_v60  ;;  %v4461_v4 = vcombine.low %v569_v59, %v573_v60  ;;  %v632_v60 = vld [vmem:[#allocation5 + $0xc90] sm:$0xff] }
 0x1c3   :  { %3816 = vmatpush1.bf16.msra.mxu0 %v4395_v2  ;;  %3980 = vmatpush1.bf16.msra.mxu1 %v4397_v29  ;;  %v580_v2 = vld [vmem:[#allocation5 + $0xaf0] sm:$0xff]  ;;  %v577_v29 = vld [vmem:[#allocation5 + $0xad8] sm:$0xff] }
 0x1c4   :  { %3817 = vmatprep.subr.bf16.mxu0 %v4404_v47  ;;  %3981 = vmatprep.subr.bf16.mxu1 %v4406_v3  ;;  %v581_v47 = vld [vmem:[#allocation5 + $0xaf8] sm:$0xff]  ;;  %v4459_v3 = vcombine.low %v568_v17, %v572_v58  ;;  %v4468_v5 = vcombine.high %v576_v1, %v580_v2 }
 0x1c5   :  { %v4470_v6 = vcombine.high %v577_v29, %v581_v47  ;;  %v4469_v13 = vcombine.low %v577_v29, %v581_v47  ;;  %v640_v47 = vld [vmem:[#allocation5 + $0xcd0] sm:$0xff] }
 0x1c7   :  { %3818 = vmatpush1.bf16.msra.mxu0 %v4403_v9  ;;  %3982 = vmatpush1.bf16.msra.mxu1 %v4405_v10  ;;  %v588_v9 = vld [vmem:[#allocation5 + $0xb30] sm:$0xff]  ;;  %v585_v10 = vld [vmem:[#allocation5 + $0xb18] sm:$0xff] }
 0x1c8   :  { %3819 = vmatprep.subr.bf16.mxu0 %v4412_v11  ;;  %3983 = vmatprep.subr.bf16.mxu1 %v4414_v40  ;;  %v589_v11 = vld [vmem:[#allocation5 + $0xb38] sm:$0xff]  ;;  %v4467_v40 = vcombine.low %v576_v1, %v580_v2  ;;  %v4476_v20 = vcombine.high %v584_v7, %v588_v9 }
 0x1c9   :  { %v4478_v23 = vcombine.high %v585_v10, %v589_v11  ;;  %v4477_v31 = vcombine.low %v585_v10, %v589_v11  ;;  %v648_v11 = vld [vmem:[#allocation5 + $0xd10] sm:$0xff] }
 0x1cb   :  { %3820 = vmatpush1.bf16.msra.mxu0 %v4411_v15  ;;  %3984 = vmatpush1.bf16.msra.mxu1 %v4413_v25  ;;  %v596_v15 = vld [vmem:[#allocation5 + $0xb70] sm:$0xff]  ;;  %v593_v25 = vld [vmem:[#allocation5 + $0xb58] sm:$0xff] }
 0x1cc   :  { %3821 = vmatprep.subr.bf16.mxu0 %v4420_v26  ;;  %3985 = vmatprep.subr.bf16.mxu1 %v4422_v28  ;;  %v597_v26 = vld [vmem:[#allocation5 + $0xb78] sm:$0xff]  ;;  %v4475_v28 = vcombine.low %v584_v7, %v588_v9  ;;  %v4484_v8 = vcombine.high %v592_v24, %v596_v15 }
 0x1cd   :  { %v4486_v32 = vcombine.high %v593_v25, %v597_v26  ;;  %v4485_v35 = vcombine.low %v593_v25, %v597_v26  ;;  %v656_v26 = vld [vmem:[#allocation5 + $0xd50] sm:$0xff] }
 0x1cf   :  { %3822 = vmatpush1.bf16.msra.mxu0 %v4419_v18  ;;  %3986 = vmatpush1.bf16.msra.mxu1 %v4421_v19  ;;  %v604_v18 = vld [vmem:[#allocation5 + $0xbb0] sm:$0xff]  ;;  %v601_v19 = vld [vmem:[#allocation5 + $0xb98] sm:$0xff] }
 0x1d0   :  { %3823 = vmatprep.subr.bf16.mxu0 %v4428_v33  ;;  %3987 = vmatprep.subr.bf16.mxu1 %v4430_v34  ;;  %v605_v33 = vld [vmem:[#allocation5 + $0xbb8] sm:$0xff]  ;;  %v4483_v34 = vcombine.low %v592_v24, %v596_v15  ;;  %v4492_v36 = vcombine.high %v600_v14, %v604_v18 }
 0x1d1   :  { %v4494_v37 = vcombine.high %v601_v19, %v605_v33  ;;  %v4493_v45 = vcombine.low %v601_v19, %v605_v33 }
 0x1d3   :  { %3824 = vmatpush1.bf16.msra.mxu0 %v4427_v39  ;;  %3988 = vmatpush1.bf16.msra.mxu1 %v4429_v42  ;;  %v612_v39 = vld [vmem:[#allocation5 + $0xbf0] sm:$0xff]  ;;  %v609_v42 = vld [vmem:[#allocation5 + $0xbd8] sm:$0xff] }
 0x1d4   :  { %3825 = vmatprep.subr.bf16.mxu0 %v4436_v43  ;;  %3989 = vmatprep.subr.bf16.mxu1 %v4438_v44  ;;  %v613_v43 = vld [vmem:[#allocation5 + $0xbf8] sm:$0xff]  ;;  %v4491_v44 = vcombine.low %v600_v14, %v604_v18  ;;  %v4500_v21 = vcombine.high %v608_v38, %v612_v39  ;;  %v4963_v18 = vld [vmem:[#allocation7] sm:$0xff] }
 0x1d5   :  { %v4502_v16 = vcombine.high %v609_v42, %v613_v43  ;;  %v4501_v50 = vcombine.low %v609_v42, %v613_v43  ;;  %v664_v42 = vld [vmem:[#allocation5 + $0xd90] sm:$0xff] }
 0x1d6   :  { %v668_v43 = vld [vmem:[#allocation5 + $0xdb0] sm:$0xff] }
 0x1d7   :  { %3826 = vmatpush1.bf16.msra.mxu0 %v4435_v30  ;;  %3990 = vmatpush1.bf16.msra.mxu1 %v4437_v46  ;;  %v620_v30 = vld [vmem:[#allocation5 + $0xc30] sm:$0xff]  ;;  %v617_v46 = vld [vmem:[#allocation5 + $0xc18] sm:$0xff] }
 0x1d8   :  { %3827 = vmatprep.subr.bf16.mxu0 %v4444_v48  ;;  %3991 = vmatprep.subr.bf16.mxu1 %v4446_v49  ;;  %v621_v48 = vld [vmem:[#allocation5 + $0xc38] sm:$0xff]  ;;  %v4499_v49 = vcombine.low %v608_v38, %v612_v39  ;;  %v4508_v51 = vcombine.high %v616_v22, %v620_v30 }
 0x1d9   :  { %v4510_v53 = vcombine.high %v617_v46, %v621_v48  ;;  %v4509_v17 = vcombine.low %v617_v46, %v621_v48 }
 0x1db   :  { %3828 = vmatpush1.bf16.msra.mxu0 %v4443_v12  ;;  %3992 = vmatpush1.bf16.msra.mxu1 %v4445_v55  ;;  %v628_v12 = vld [vmem:[#allocation5 + $0xc70] sm:$0xff]  ;;  %v625_v55 = vld [vmem:[#allocation5 + $0xc58] sm:$0xff] }
 0x1dc   :  { %3829 = vmatprep.subr.bf16.mxu0 %v4452_v56  ;;  %3993 = vmatprep.subr.bf16.mxu1 %v4454_v57  ;;  %v629_v56 = vld [vmem:[#allocation5 + $0xc78] sm:$0xff]  ;;  %v4507_v57 = vcombine.low %v616_v22, %v620_v30  ;;  %v4516_v58 = vcombine.high %v624_v54, %v628_v12 }
 0x1dd   :  { %v4518_v59 = vcombine.high %v625_v55, %v629_v56  ;;  %v4517_v1 = vcombine.low %v625_v55, %v629_v56 }
 0x1df   :  { %3830 = vmatpush1.bf16.msra.mxu0 %v4451_v61  ;;  %3994 = vmatpush1.bf16.msra.mxu1 %v4453_v62  ;;  %v636_v61 = vld [vmem:[#allocation5 + $0xcb0] sm:$0xff]  ;;  %v633_v62 = vld [vmem:[#allocation5 + $0xc98] sm:$0xff] }
 0x1e0   :  { %3831 = vmatprep.subr.bf16.mxu0 %v4460_v63  ;;  %3995 = vmatprep.subr.bf16.mxu1 %v4462_v0  ;;  %v637_v63 = vld [vmem:[#allocation5 + $0xcb8] sm:$0xff]  ;;  %v4515_v0 = vcombine.low %v624_v54, %v628_v12  ;;  %v4524_v2 = vcombine.high %v632_v60, %v636_v61  ;;  %v4523_v7 = vcombine.low %v632_v60, %v636_v61  ;;  %v672_v54 = vld [vmem:[#allocation5 + $0xdd0] sm:$0xff] }
 0x1e1   :  { %v4526_v29 = vcombine.high %v633_v62, %v637_v63  ;;  %v676_v12 = vld [vmem:[#allocation5 + $0xdf0] sm:$0xff] }
 0x1e3   :  { %3832 = vmatpush1.bf16.msra.mxu0 %v4459_v3  ;;  %3996 = vmatpush1.bf16.msra.mxu1 %v4461_v4  ;;  %v644_v3 = vld [vmem:[#allocation5 + $0xcf0] sm:$0xff]  ;;  %v641_v4 = vld [vmem:[#allocation5 + $0xcd8] sm:$0xff] }
 0x1e4   :  { %3833 = vmatprep.subr.bf16.mxu0 %v4468_v5  ;;  %3997 = vmatprep.subr.bf16.mxu1 %v4470_v6  ;;  %v645_v5 = vld [vmem:[#allocation5 + $0xcf8] sm:$0xff]  ;;  %v744_v6 = vlaneseq  ;;  %v4532_v9 = vcombine.high %v640_v47, %v644_v3  ;;  %v4531_v24 = vcombine.low %v640_v47, %v644_v3  ;;  %v4564_v3 = vcombine.high %v672_v54, %v676_v12 }
 0x1e5   :  { %v4534_v10 = vcombine.high %v641_v4, %v645_v5  ;;  %v4533_v15 = vcombine.low %v641_v4, %v645_v5 }
 0x1e7   :  { %3834 = vmatpush1.bf16.msra.mxu0 %v4467_v40  ;;  %3998 = vmatpush1.bf16.msra.mxu1 %v4469_v13  ;;  %v652_v40 = vld [vmem:[#allocation5 + $0xd30] sm:$0xff]  ;;  %v649_v13 = vld [vmem:[#allocation5 + $0xd18] sm:$0xff] }
 0x1e8   :  { %3835 = vmatprep.subr.bf16.mxu0 %v4476_v20  ;;  %3999 = vmatprep.subr.bf16.mxu1 %v4478_v23  ;;  %v653_v20 = vld [vmem:[#allocation5 + $0xd38] sm:$0xff]  ;;  %v4960_v23 = vshrl.u32 %v744_v6, 7  ;;  %v4539_v14 = vcombine.low %v648_v11, %v652_v40 }
 0x1e9   :  { %v4542_v25 = vcombine.high %v649_v13, %v653_v20 }
 0x1ea   :  { %v754_v19 = vsub.s32 2, %v4960_v23  ;;  %v750_v33 = vsub.s32 1, %v4960_v23 }
 0x1eb   :  { %3836 = vmatpush1.bf16.msra.mxu0 %v4475_v28  ;;  %4000 = vmatpush1.bf16.msra.mxu1 %v4477_v31  ;;  %v660_v28 = vld [vmem:[#allocation5 + $0xd70] sm:$0xff]  ;;  %v746_v31 = vsub.s32 0, %v4960_v23 }
 0x1ec   :  { %3837 = vmatprep.subr.bf16.mxu0 %v4484_v8  ;;  %4001 = vmatprep.subr.bf16.mxu1 %v4486_v32  ;;  %v657_v8 = vld [vmem:[#allocation5 + $0xd58] sm:$0xff]  ;;  %v4548_v38 = vcombine.high %v656_v26, %v660_v28  ;;  %v751_v22 = vrot.slane %v4963_v18, %v750_v33  ;;  %v4547_v46 = vcombine.low %v656_v26, %v660_v28  ;;  %v692_v26 = vld [vmem:[#allocation5 + $0xe70] sm:$0xff] }
 0x1ed   :  { %v661_v32 = vld [vmem:[#allocation5 + $0xd78] sm:$0xff] }
 0x1ee   :  { %v4550_v39 = vcombine.high %v657_v8, %v661_v32  ;;  %v689_v28 = vld [vmem:[#allocation5 + $0xe58] sm:$0xff] }
 0x1ef   :  { %3838 = vmatpush1.bf16.msra.mxu0 %v4483_v34  ;;  %4002 = vmatpush1.bf16.msra.mxu1 %v4485_v35  ;;  %v4793_v34 = vmov 1983009808  }
 0x1f0   :  { %3839 = vmatprep.subr.bf16.mxu0 %v4492_v36  ;;  %4003 = vmatprep.subr.bf16.mxu1 %v4494_v37  ;;  %v4068_v35 = vunpack.c.l.s4 %v4793_v34  ;;  %v4541_v36 = vcombine.low %v649_v13, %v653_v20  ;;  %v758_v37 = vsub.s32 3, %v4960_v23  ;;  %v4563_v13 = vcombine.low %v672_v54, %v676_v12  ;;  %v696_v34 = vld [vmem:[#allocation5 + $0xe90] sm:$0xff] }
 0x1f2   :  { %v4069_v30 = vunpack.c.0.s8 %v4068_v35  ;;  %v759_v48 = vrot.slane %v4963_v18, %v758_v37  ;;  %v700_v35 = vld [vmem:[#allocation5 + $0xeb0] sm:$0xff]  ;;  %v701_v37 = vld [vmem:[#allocation5 + $0xeb8] sm:$0xff] }
 0x1f3   :  { %3840 = vmatpush1.bf16.msra.mxu0 %v4491_v44  ;;  %4004 = vmatpush1.bf16.msra.mxu1 %v4493_v45  ;;  %v747_v44 = vrot.slane %v4963_v18, %v746_v31  ;;  %v665_v45 = vld [vmem:[#allocation5 + $0xd98] sm:$0xff] }
 0x1f4   :  { %3841 = vmatprep.subr.bf16.mxu0 %v4500_v21  ;;  %4005 = vmatprep.subr.bf16.mxu1 %v4502_v16  ;;  %v669_v21 = vld [vmem:[#allocation5 + $0xdb8] sm:$0xff]  ;;  %v755_v16 = vrot.slane %v4963_v18, %v754_v19  ;;  %v4973_v61 = vsub.s32 %v4069_v30, %v4960_v23 }
 0x1f5   :  { %v4557_v47 = vcombine.low %v665_v45, %v669_v21  ;;  %v693_v31 = vld [vmem:[#allocation5 + $0xe78] sm:$0xff] }
 0x1f6   :  { %v4582_v33 = vcombine.high %v689_v28, %v693_v31 }
 0x1f7   :  { %3842 = vmatpush1.bf16.msra.mxu0 %v4499_v49  ;;  %4006 = vmatpush1.bf16.msra.mxu1 %v4501_v50  ;;  %v4549_v49 = vcombine.low %v657_v8, %v661_v32  ;;  %v4556_v50 = vcombine.high %v664_v42, %v668_v43 }
 0x1f8   :  { %3852 = vmatprep.subr.bf16.mxu0 %v4508_v51  ;;  %4016 = vmatprep.subr.bf16.mxu1 %v4510_v53  ;;  %v4558_v53 = vcombine.high %v665_v45, %v669_v21  ;;  %v708_v45 = vld [vmem:[#allocation5 + $0xef0] sm:$0xff]  ;;  %v705_v21 = vld [vmem:[#allocation5 + $0xed8] sm:$0xff] }
 0x1fa   :  { %3844 = vmatmul.mubr.bf16.vlgmr.msra.gmra.mrb[4].mxu0 %v4928_v41  ;;  %4008 = vmatmul.mubr.bf16.vlgmr.msra.gmra.mrb[4].mxu1 %v4928_v41  ;;  %v4525_v41 = vcombine.low %v633_v62, %v637_v63 }
 0x1fb   :  { %3853 = vmatpush1.bf16.msra.mxu0 %v4507_v57  ;;  %4017 = vmatpush1.bf16.msra.mxu1 %v4509_v17  ;;  %v673_v17 = vld [vmem:[#allocation5 + $0xdd8] sm:$0xff] }
 0x1fc   :  { %3854 = vmatprep.subr.bf16.mxu0 %v4516_v58  ;;  %4018 = vmatprep.subr.bf16.mxu1 %v4518_v59  ;;  %v677_v58 = vld [vmem:[#allocation5 + $0xdf8] sm:$0xff] }
 0x1fd   :  { %3884 = vmatprep.mubr.bf16.mxu0 %v4931_v52  ;;  %4048 = vmatprep.mubr.bf16.mxu1 %v4931_v52  ;;  %v4540_v52 = vcombine.high %v648_v11, %v652_v40  ;;  %v4566_v6 = vcombine.high %v673_v17, %v677_v58  ;;  %v685_v11 = vld [vmem:[#allocation5 + $0xe38] sm:$0xff] }
 0x1ff   :  { %3855 = vmatpush1.bf16.msra.mxu0 %v4515_v0  ;;  %4019 = vmatpush1.bf16.msra.mxu1 %v4517_v1  ;;  %v4555_v0 = vcombine.low %v664_v42, %v668_v43  ;;  %v4588_v42 = vcombine.high %v696_v34, %v700_v35 }
 0x200   :  { %3856 = vmatprep.subr.bf16.mxu0 %v4524_v2  ;;  %4020 = vmatprep.subr.bf16.mxu1 %v4526_v29 }
 0x203   :  { %3857 = vmatpush1.bf16.msra.mxu0 %v4523_v7  ;;  %4021 = vmatpush1.bf16.msra.mxu1 %v4525_v41  ;;  %v680_v7 = vld [vmem:[#allocation5 + $0xe10] sm:$0xff] }
 0x204   :  { %3858 = vmatprep.subr.bf16.mxu0 %v4532_v9  ;;  %4022 = vmatprep.subr.bf16.mxu1 %v4534_v10  ;;  %v684_v41 = vld [vmem:[#allocation5 + $0xe30] sm:$0xff]  ;;  %v681_v10 = vld [vmem:[#allocation5 + $0xe18] sm:$0xff] }
 0x205   :  { %v4571_v32 = vcombine.low %v680_v7, %v684_v41 }
 0x207   :  { %3859 = vmatpush1.bf16.msra.mxu0 %v4531_v24  ;;  %4023 = vmatpush1.bf16.msra.mxu1 %v4533_v15  ;;  %v4565_v24 = vcombine.low %v673_v17, %v677_v58  ;;  %v4572_v15 = vcombine.high %v680_v7, %v684_v41  ;;  %v724_v17 = vld [vmem:[#allocation5 + $0xf70] sm:$0xff]  ;;  %v721_v58 = vld [vmem:[#allocation5 + $0xf58] sm:$0xff] }
 0x208   :  { %3860 = vmatprep.subr.bf16.mxu0 %v4540_v52  ;;  %4024 = vmatprep.subr.bf16.mxu1 %v4542_v25  ;;  %v4574_v52 = vcombine.high %v681_v10, %v685_v11  ;;  %v688_v25 = vld [vmem:[#allocation5 + $0xe50] sm:$0xff] }
 0x209   :  { %v4580_v19 = vcombine.high %v688_v25, %v692_v26  ;;  %v736_v7 = vld [vmem:[#allocation5 + $0xfd0] sm:$0xff] }
 0x20a   :  { %v740_v41 = vld [vmem:[#allocation5 + $0xff0] sm:$0xff] }
 0x20b   :  { %3861 = vmatpush1.bf16.msra.mxu0 %v4539_v14  ;;  %4025 = vmatpush1.bf16.msra.mxu1 %v4541_v36  ;;  %v4573_v14 = vcombine.low %v681_v10, %v685_v11  ;;  %v697_v36 = vld [vmem:[#allocation5 + $0xe98] sm:$0xff] }
 0x20c   :  { %3862 = vmatprep.subr.bf16.mxu0 %v4548_v38  ;;  %4026 = vmatprep.subr.bf16.mxu1 %v4550_v39  ;;  %v4579_v38 = vcombine.low %v688_v25, %v692_v26  ;;  %v4581_v39 = vcombine.low %v689_v28, %v693_v31  ;;  %v4590_v43 = vcombine.high %v697_v36, %v701_v37  ;;  %v741_v10 = vld [vmem:[#allocation5 + $0xff8] sm:$0xff]  ;;  %v770_v25 = vsub.s32 6, %v4960_v23 }
 0x20d   :  { %v3558_v51 = vpop.f32.mrb[0].mxu0  ;;  %v3722_v56 = vpop.f32.mrb[0].mxu1  ;;  %v4589_v30 = vcombine.low %v697_v36, %v701_v37  ;;  %v766_v26 = vsub.s32 5, %v4960_v23  ;;  %v774_v28 = vsub.s32 7, %v4960_v23 }
 0x20e   :  { %v4631_v55 = vadd.f32 %v3558_v51, %v747_v44  ;;  %v3560_v57 = vpop.f32.mrb[1].mxu0  ;;  %v4633_v59 = vadd.f32 %v3722_v56, %v755_v16  ;;  %v3724_v62 = vpop.f32.mrb[1].mxu1  ;;  %v704_v44 = vld [vmem:[#allocation5 + $0xed0] sm:$0xff]  ;;  %v709_v16 = vld [vmem:[#allocation5 + $0xef8] sm:$0xff] }
 0x20f   :  { %v4632_v60 = vadd.f32 %v3560_v57, %v751_v22  ;;  %v3562_v63 = vpop.f32.mrb[2].mxu0  ;;  %3863 = vmatpush1.bf16.msra.mxu0 %v4547_v46  ;;  %v4634_v1 = vadd.f32 %v3724_v62, %v759_v48  ;;  %v3726_v2 = vpop.f32.mrb[2].mxu1  ;;  %4027 = vmatpush1.bf16.msra.mxu1 %v4549_v49  ;;  %v4587_v22 = vcombine.low %v696_v34, %v700_v35  ;;  %v712_v49 = vld [vmem:[#allocation5 + $0xf10] sm:$0xff]  ;;  %v713_v51 = vld [vmem:[#allocation5 + $0xf18] sm:$0xff] }
 0x210   :  { %v3563_v29 = vpop.f32.mrb[3].mxu0  ;;  %3864 = vmatprep.subr.bf16.mxu0 %v4556_v50  ;;  %v3727_v5 = vpop.f32.mrb[3].mxu1  ;;  %4028 = vmatprep.subr.bf16.mxu1 %v4558_v53  ;;  %v4596_v46 = vcombine.high %v704_v44, %v708_v45  ;;  %v4598_v48 = vcombine.high %v705_v21, %v709_v16  ;;  %v716_v50 = vld [vmem:[#allocation5 + $0xf30] sm:$0xff]  ;;  %v717_v53 = vld [vmem:[#allocation5 + $0xf38] sm:$0xff]  ;;  %v4595_v54 = vcombine.low %v704_v44, %v708_v45 }
 0x211   :  { %v4065_v4 = vcombine.low %v4631_v55, %v4632_v60  ;;  %v4066_v9 = vcombine.low %v4633_v59, %v4634_v1  ;;  %v4597_v12 = vcombine.low %v705_v21, %v709_v16  ;;  %v4604_v55 = vcombine.high %v712_v49, %v716_v50  ;;  %v720_v57 = vld [vmem:[#allocation5 + $0xf50] sm:$0xff]  ;;  %v725_v59 = vld [vmem:[#allocation5 + $0xf78] sm:$0xff] }
 0x212   :  { %v4606_v56 = vcombine.high %v713_v51, %v717_v53  ;;  %v4603_v60 = vcombine.low %v712_v49, %v716_v50  ;;  %v4605_v62 = vcombine.low %v713_v51, %v717_v53  ;;  %v4612_v63 = vcombine.high %v720_v57, %v724_v17  ;;  %v728_v1 = vld [vmem:[#allocation5 + $0xf90] sm:$0xff]  ;;  %v729_v29 = vld [vmem:[#allocation5 + $0xf98] sm:$0xff] }
 0x213   :  { %v4073_v40 = vrot.slane %v4065_v4, %v4973_v61  ;;  %3865 = vmatpush1.bf16.msra.mxu0 %v4555_v0  ;;  %v4080_v20 = vrot.slane %v4066_v9, %v4973_v61  ;;  %4029 = vmatpush1.bf16.msra.mxu1 %v4557_v47  ;;  %v4614_v0 = vcombine.high %v721_v58, %v725_v59  ;;  %v732_v2 = vld [vmem:[#allocation5 + $0xfb0] sm:$0xff]  ;;  %v733_v47 = vld [vmem:[#allocation5 + $0xfb8] sm:$0xff] }
 0x214   :  { %3866 = vmatprep.subr.bf16.mxu0 %v4564_v3  ;;  %4030 = vmatprep.subr.bf16.mxu1 %v4566_v6  ;;  %v4611_v3 = vcombine.low %v720_v57, %v724_v17  ;;  %v4613_v4 = vcombine.low %v721_v58, %v725_v59  ;;  %v4620_v5 = vcombine.high %v728_v1, %v732_v2  ;;  %v737_v9 = vld [vmem:[#allocation5 + $0xfd8] sm:$0xff] }
 0x215   :  { %v4081_v8 = vcombine.low %v4073_v40, %v4080_v20  ;;  %v4622_v6 = vcombine.high %v729_v29, %v733_v47  ;;  %v4619_v11 = vcombine.low %v728_v1, %v732_v2  ;;  %v4621_v40 = vcombine.low %v729_v29, %v733_v47 }
 0x216   :  { %v4630_v20 = vcombine.high %v737_v9, %v741_v10 }
 0x217   :  { %3867 = vmatpush1.bf16.msra.mxu0 %v4563_v13  ;;  %4031 = vmatpush1.bf16.msra.mxu1 %v4565_v24  ;;  %4101 = vst [vmem:[#allocation8] sm:$0xff] %v4081_v8  ;;  %v4628_v13 = vcombine.high %v736_v7, %v740_v41  ;;  %v4627_v24 = vcombine.low %v736_v7, %v740_v41 }
 0x218   :  { %3868 = vmatprep.subr.bf16.mxu0 %v4572_v15  ;;  %4032 = vmatprep.subr.bf16.mxu1 %v4574_v52  ;;  %v4629_v15 = vcombine.low %v737_v9, %v741_v10  ;;  %v762_v52 = vsub.s32 4, %v4960_v23  ;;  %v771_v8 = vrot.slane %v4963_v18, %v770_v25 }
 0x21a   :  { %v763_v31 = vrot.slane %v4963_v18, %v762_v52 }
 0x21b   :  { %3869 = vmatpush1.bf16.msra.mxu0 %v4571_v32  ;;  %4033 = vmatpush1.bf16.msra.mxu1 %v4573_v14  ;;  %v767_v32 = vrot.slane %v4963_v18, %v766_v26  ;;  %v775_v14 = vrot.slane %v4963_v18, %v774_v28 }
 0x21c   :  { %3870 = vmatprep.subr.bf16.mxu0 %v4580_v19  ;;  %4034 = vmatprep.subr.bf16.mxu1 %v4582_v33 }
 0x21f   :  { %3871 = vmatpush1.bf16.msra.mxu0 %v4579_v38  ;;  %4035 = vmatpush1.bf16.msra.mxu1 %v4581_v39 }
 0x220   :  { %3872 = vmatprep.subr.bf16.mxu0 %v4588_v42  ;;  %4036 = vmatprep.subr.bf16.mxu1 %v4590_v43 }
 0x223   :  { %3873 = vmatpush1.bf16.msra.mxu0 %v4587_v22  ;;  %4037 = vmatpush1.bf16.msra.mxu1 %v4589_v30 }
 0x224   :  { %3874 = vmatprep.subr.bf16.mxu0 %v4596_v46  ;;  %4038 = vmatprep.subr.bf16.mxu1 %v4598_v48 }
 0x227   :  { %3875 = vmatpush1.bf16.msra.mxu0 %v4595_v54  ;;  %4039 = vmatpush1.bf16.msra.mxu1 %v4597_v12 }
 0x228   :  { %3876 = vmatprep.subr.bf16.mxu0 %v4604_v55  ;;  %4040 = vmatprep.subr.bf16.mxu1 %v4606_v56 }
 0x22b   :  { %3877 = vmatpush1.bf16.msra.mxu0 %v4603_v60  ;;  %4041 = vmatpush1.bf16.msra.mxu1 %v4605_v62 }
 0x22c   :  { %3878 = vmatprep.subr.bf16.mxu0 %v4612_v63  ;;  %4042 = vmatprep.subr.bf16.mxu1 %v4614_v0 }
 0x22f   :  { %3879 = vmatpush1.bf16.msra.mxu0 %v4611_v3  ;;  %4043 = vmatpush1.bf16.msra.mxu1 %v4613_v4 }
 0x230   :  { %3880 = vmatprep.subr.bf16.mxu0 %v4620_v5  ;;  %4044 = vmatprep.subr.bf16.mxu1 %v4622_v6 }
 0x233   :  { %3881 = vmatpush1.bf16.msra.mxu0 %v4619_v11  ;;  %4045 = vmatpush1.bf16.msra.mxu1 %v4621_v40 }
 0x234   :  { %3882 = vmatprep.subr.bf16.mxu0 %v4628_v13  ;;  %4046 = vmatprep.subr.bf16.mxu1 %v4630_v20 }
 0x237   :  { %3883 = vmatpush1.bf16.msra.mxu0 %v4627_v24  ;;  %4047 = vmatpush1.bf16.msra.mxu1 %v4629_v15 }
 0x23a   :  { %3885 = vmatmul.mubr.bf16.vlgmr.msra.gmra.mrb[4].mxu0 %v4942_v27  ;;  %4049 = vmatmul.mubr.bf16.vlgmr.msra.gmra.mrb[4].mxu1 %v4942_v27 }
 0x30d   :  { %v3886_v19 = vpop.f32.mrb[4].mxu0  ;;  %v4050_v34 = vpop.f32.mrb[4].mxu1 }
 0x30e   :  { %v4635_v33 = vadd.f32 %v3886_v19, %v763_v31  ;;  %v3888_v27 = vpop.f32.mrb[5].mxu0  ;;  %v4637_v35 = vadd.f32 %v4050_v34, %v771_v8  ;;  %v4052_v37 = vpop.f32.mrb[5].mxu1 }
 0x30f   :  { %v4636_v36 = vadd.f32 %v3888_v27, %v767_v32  ;;  %v3890_v38 = vpop.f32.mrb[6].mxu0  ;;  %v4638_v39 = vadd.f32 %v4052_v37, %v775_v14  ;;  %v4054_v42 = vpop.f32.mrb[6].mxu1 }
 0x310   :  { %v3891_v43 = vpop.f32.mrb[7].mxu0  ;;  %v4055_v44 = vpop.f32.mrb[7].mxu1 }
 0x311   :  { %v4082_v23 = vcombine.low %v4635_v33, %v4636_v36  ;;  %v4083_v45 = vcombine.low %v4637_v35, %v4638_v39 }
 0x313   :  { %v4090_v21 = vrot.slane %v4082_v23, %v4973_v61  ;;  %v4097_v18 = vrot.slane %v4083_v45, %v4973_v61 }
 0x315   :  { %v4098_v16 = vcombine.low %v4090_v21, %v4097_v18 }
 0x317   :  { %4102 = vst [vmem:[#allocation8 + $0x8] sm:$0xff] %v4098_v16 }
 0x318   :  { %4771 = shalt.err (!%p4768_p0)
}
 0x319   :  { %s4772_s25 = scalar_lea.hbm %s5004_s3, 256 }
 0x31a   :  { %p4773_p1 = scmp.ne.s32.totalorder %s5004_s3, %s4772_s25  ;;  %p4776_p2 = scmp.lt.u32.totalorder %s4772_s25, %s5004_s3 }
 0x31c   :  { %p4778_p3 = pnand %p4776_p2, %p4773_p1 }
 0x31e   :  { %4781 = shalt.err (!%p4778_p3)
}
 0x31f   :  { %4112 = dma.vmem_to_hbm [thread:$0]  %s4110_s21, 256, %s5004_s3, [#allocation4]  }
 0x320   :  { %4786 = dma.done.wait [#allocation4], 256  }
 0x321   :  { %4787 = vsyncadd [#allocation4], 4294967040 }
 0x322   :  { %4116 = vsyncpa [#allocation3], 1 }
 0x323   :  { %4117 = vsyncpa [#allocation6], 1 }
 0x324   :  { %4118 = vsyncpa [#allocation4], 1 }

</bundles_post_ra>
